<compile_context>
chip_gen: v7x
topology: tpu7x:2x2x1
jax: 0.10.0
libtpu: 0.0.40
codegen_flags: <defaults>
</compile_context>

<pallas_src>
import math
from functools import partial

import jax
import jax.numpy as jnp
from jax.experimental import pallas as pl
from jax.experimental.pallas import tpu as pltpu

# ---- small, module-consistent sizes (sentence_max_length=64, hidden=768 in
#      the original; scaled down for this synthetic kernel) -------------------
BATCH = 2
SEQ = 8            # sentence_max_length (scaled down from 64)
HIDDEN = 32        # hidden size (scaled down from 768)
NUM_HEADS = 2
HEAD_DIM = HIDDEN // NUM_HEADS
FFN = 64           # intermediate size (scaled down from 3072)
NUM_LAYERS = 2


def _layernorm(x, gamma, beta, eps=1e-12):
    mean = jnp.mean(x, axis=-1, keepdims=True)
    var = jnp.mean((x - mean) ** 2, axis=-1, keepdims=True)
    return (x - mean) * jax.lax.rsqrt(var + eps) * gamma + beta


def siamese_encoder_kernel(x_ref,
                           wqkv_ref, bqkv_ref, wo_ref, bo_ref,
                           g1_ref, be1_ref,
                           w1_ref, b1_ref, w2_ref, b2_ref,
                           g2_ref, be2_ref,
                           out_ref):
    """Full NUM_LAYERS BERT encoder over the fused Siamese batch.

    x_ref:   (BT, S, H) f32      (BT = 2 * BATCH, both branches fused)
    w*_ref:  (L, ...)  stacked per-layer weights (matrices bf16, rest f32)
    out_ref: (BT, S, H) f32
    """
    bt, s, h = x_ref.shape
    n = bt * s
    scale = 1.0 / math.sqrt(HEAD_DIM)

    # Batch folded into the sublane axis for all weight matmuls.
    cur = x_ref[...].astype(jnp.float32).reshape(n, h)          # (BT*S, H)

    for li in range(NUM_LAYERS):                                 # static unroll
        # --- fused QKV projection: one MXU push with N = 3H ------------------
        qkv = jnp.dot(cur.astype(jnp.bfloat16), wqkv_ref[li],
                      preferred_element_type=jnp.float32) + bqkv_ref[li]
        q = qkv[:, 0 * h:1 * h].reshape(bt, s, h)
        k = qkv[:, 1 * h:2 * h].reshape(bt, s, h)
        v = qkv[:, 2 * h:3 * h].reshape(bt, s, h)

        # --- multi-head attention: batched einsum over the whole fused batch -
        ctx_heads = []
        for hi in range(NUM_HEADS):                              # static (2)
            sl = slice(hi * HEAD_DIM, (hi + 1) * HEAD_DIM)
            qh = q[:, :, sl].astype(jnp.bfloat16)                # (BT, S, HD)
            kh = k[:, :, sl].astype(jnp.bfloat16)
            vh = v[:, :, sl].astype(jnp.bfloat16)
            sc = jnp.einsum('bqd,bkd->bqk', qh, kh,
                            preferred_element_type=jnp.float32) * scale
            pr = jax.nn.softmax(sc, axis=-1)                     # f32
            ctx_heads.append(
                jnp.einsum('bqk,bkd->bqd', pr.astype(jnp.bfloat16), vh,
                           preferred_element_type=jnp.float32))
        ctx = jnp.concatenate(ctx_heads, axis=-1).reshape(n, h)  # (BT*S, H)

        attn = jnp.dot(ctx.astype(jnp.bfloat16), wo_ref[li],
                       preferred_element_type=jnp.float32) + bo_ref[li]
        h1 = _layernorm(cur + attn, g1_ref[li], be1_ref[li])

        # --- feed-forward -----------------------------------------------------
        ff = jnp.dot(h1.astype(jnp.bfloat16), w1_ref[li],
                     preferred_element_type=jnp.float32) + b1_ref[li]
        ff = jax.nn.gelu(ff)
        ff = jnp.dot(ff.astype(jnp.bfloat16), w2_ref[li],
                     preferred_element_type=jnp.float32) + b2_ref[li]
        cur = _layernorm(h1 + ff, g2_ref[li], be2_ref[li])

    out_ref[...] = cur.reshape(bt, s, h).astype(out_ref.dtype)


def siamese_encode(x, p):
    """Synthetic kobert(inputs_embeds=x).last_hidden_state for the fused batch.

    Single pallas_call, no grid: activations (~16 KiB) and all stacked layer
    weights (~50 KiB) trivially fit VMEM on v5e/v6e/v7x, so everything is
    resident for the whole forward pass.
    """
    bt, s, h = x.shape
    vmem = pl.BlockSpec(memory_space=pltpu.MemorySpace.VMEM)
    return pl.pallas_call(
        siamese_encoder_kernel,
        out_shape=jax.ShapeDtypeStruct((bt, s, h), jnp.float32),
        in_specs=[vmem] * 13,
        out_specs=vmem,
    )(x,
      p["wqkv"], p["bqkv"], p["wo"], p["bo"],
      p["ln1_g"], p["ln1_b"],
      p["w1"], p["b1"], p["w2"], p["b2"],
      p["ln2_g"], p["ln2_b"])


def init_params(key):
    """Deterministic synthetic KoBERT-style encoder weights, stacked per layer.

    Weight matrices are stored in bf16 (halves DMA bytes, native MXU rate);
    biases and LayerNorm parameters stay f32.
    """
    s = 0.05

    def one_layer(li):
        k = jax.random.fold_in(key, li)
        ks = jax.random.split(k, 6)
        wq = jax.random.normal(ks[0], (HIDDEN, HIDDEN), jnp.float32) * s
        wk = jax.random.normal(ks[1], (HIDDEN, HIDDEN), jnp.float32) * s
        wv = jax.random.normal(ks[2], (HIDDEN, HIDDEN), jnp.float32) * s
        return dict(
            wqkv=jnp.concatenate([wq, wk, wv], axis=1),          # (H, 3H) fused
            bqkv=jnp.zeros((1, 3 * HIDDEN), jnp.float32),
            wo=jax.random.normal(ks[3], (HIDDEN, HIDDEN), jnp.float32) * s,
            bo=jnp.zeros((1, HIDDEN), jnp.float32),
            ln1_g=jnp.ones((1, HIDDEN), jnp.float32),
            ln1_b=jnp.zeros((1, HIDDEN), jnp.float32),
            w1=jax.random.normal(ks[4], (HIDDEN, FFN), jnp.float32) * s,
            b1=jnp.zeros((1, FFN), jnp.float32),
            w2=jax.random.normal(ks[5], (FFN, HIDDEN), jnp.float32) * s,
            b2=jnp.zeros((1, HIDDEN), jnp.float32),
            ln2_g=jnp.ones((1, HIDDEN), jnp.float32),
            ln2_b=jnp.zeros((1, HIDDEN), jnp.float32),
        )

    per_layer = [one_layer(li) for li in range(NUM_LAYERS)]
    stacked = {name: jnp.stack([p[name] for p in per_layer], axis=0)
               for name in per_layer[0]}
    for name in ("wqkv", "wo", "w1", "w2"):
        stacked[name] = stacked[name].astype(jnp.bfloat16)
    return stacked


@jax.jit
def siamese_forward(x1, x2, params):
    """Matches SiameseNetwork.forward: encode both inputs with SHARED weights
    and flatten each last_hidden_state to (-1, SEQ * HIDDEN).

    The two branches are fused into one encoder pass (weights are shared), then
    split back — one pallas_call total instead of two per layer.
    """
    b = x1.shape[0]
    x = jnp.concatenate([x1, x2], axis=0)            # (2B, S, H)
    h = siamese_encode(x, params)                    # (2B, S, H)
    flat = h.reshape(2 * b, SEQ * HIDDEN)
    context_out = flat[:b]
    question_out = flat[b:]
    return context_out, question_out


if __name__ == "__main__":
    key = jax.random.PRNGKey(0)
    k1, k2, kp = jax.random.split(key, 3)
    # inputs_embeds for the two branches: (B, S, H)
    x1 = jax.random.normal(k1, (BATCH, SEQ, HIDDEN), jnp.float32)
    x2 = jax.random.normal(k2, (BATCH, SEQ, HIDDEN), jnp.float32)
    params = init_params(kp)

    ctx_out, q_out = siamese_forward(x1, x2, params)
    jax.block_until_ready((ctx_out, q_out))

    assert ctx_out.shape == (BATCH, SEQ * HIDDEN)
    assert q_out.shape == (BATCH, SEQ * HIDDEN)
    assert bool(jnp.all(jnp.isfinite(ctx_out))) and bool(jnp.all(jnp.isfinite(q_out)))
    print("KERNEL_OK")
</pallas_src>

<mosaic_0001>
module attributes {stable_mosaic.version = 11 : i64} {
  func.func @siamese_encoder_kernel(%arg0: memref<4x8x32xf32, #tpu.memory_space<vmem>>, %arg1: memref<2x32x96xbf16, #tpu.memory_space<vmem>>, %arg2: memref<2x1x96xf32, #tpu.memory_space<vmem>>, %arg3: memref<2x32x32xbf16, #tpu.memory_space<vmem>>, %arg4: memref<2x1x32xf32, #tpu.memory_space<vmem>>, %arg5: memref<2x1x32xf32, #tpu.memory_space<vmem>>, %arg6: memref<2x1x32xf32, #tpu.memory_space<vmem>>, %arg7: memref<2x32x64xbf16, #tpu.memory_space<vmem>>, %arg8: memref<2x1x64xf32, #tpu.memory_space<vmem>>, %arg9: memref<2x64x32xbf16, #tpu.memory_space<vmem>>, %arg10: memref<2x1x32xf32, #tpu.memory_space<vmem>>, %arg11: memref<2x1x32xf32, #tpu.memory_space<vmem>>, %arg12: memref<2x1x32xf32, #tpu.memory_space<vmem>>, %arg13: memref<4x8x32xf32, #tpu.memory_space<vmem>>) attributes {dimension_semantics = [], scalar_prefetch = 0 : i64, scratch_operands = 0 : i64, tpu.core_type = #tpu.core_type<tc>} {
    %c0 = arith.constant 0 : index
    %c0_0 = arith.constant 0 : index
    %c0_1 = arith.constant 0 : index
    %0 = vector.load %arg0[%c0, %c0_0, %c0_1] : memref<4x8x32xf32, #tpu.memory_space<vmem>>, vector<4x8x32xf32>
    %1 = vector.shape_cast %0 : vector<4x8x32xf32> to vector<32x32xf32>
    %2 = arith.truncf %1 : vector<32x32xf32> to vector<32x32xbf16>
    %c0_2 = arith.constant 0 : index
    %c0_3 = arith.constant 0 : index
    %c0_4 = arith.constant 0 : index
    %3 = vector.load %arg1[%c0_2, %c0_3, %c0_4] : memref<2x32x96xbf16, #tpu.memory_space<vmem>>, vector<1x32x96xbf16>
    %4 = vector.shape_cast %3 : vector<1x32x96xbf16> to vector<32x96xbf16>
    %cst = arith.constant dense<0.000000e+00> : vector<32x96xf32>
    %5 = tpu.matmul %2, %4, %cst {dimension_numbers = #tpu.dot_dimension_numbers<[1], [0], [0], [1], [0, 0, 1, 1], [], []>} : vector<32x32xbf16>, vector<32x96xbf16>, vector<32x96xf32> -> vector<32x96xf32>
    %c0_5 = arith.constant 0 : index
    %c0_6 = arith.constant 0 : index
    %c0_7 = arith.constant 0 : index
    %6 = vector.load %arg2[%c0_5, %c0_6, %c0_7] : memref<2x1x96xf32, #tpu.memory_space<vmem>>, vector<1x1x96xf32>
    %7 = vector.shape_cast %6 : vector<1x1x96xf32> to vector<1x96xf32>
    %8 = vector.broadcast %7 : vector<1x96xf32> to vector<32x96xf32>
    %9 = arith.addf %5, %8 : vector<32x96xf32>
    %10 = vector.extract_strided_slice %9 {offsets = [0, 0], sizes = [32, 32], strides = [1, 1]} : vector<32x96xf32> to vector<32x32xf32>
    %11 = vector.shape_cast %10 : vector<32x32xf32> to vector<4x8x32xf32>
    %12 = vector.extract_strided_slice %9 {offsets = [0, 32], sizes = [32, 32], strides = [1, 1]} : vector<32x96xf32> to vector<32x32xf32>
    %13 = vector.shape_cast %12 : vector<32x32xf32> to vector<4x8x32xf32>
    %14 = vector.extract_strided_slice %9 {offsets = [0, 64], sizes = [32, 32], strides = [1, 1]} : vector<32x96xf32> to vector<32x32xf32>
    %15 = vector.shape_cast %14 : vector<32x32xf32> to vector<4x8x32xf32>
    %16 = vector.extract_strided_slice %11 {offsets = [0, 0, 0], sizes = [4, 8, 16], strides = [1, 1, 1]} : vector<4x8x32xf32> to vector<4x8x16xf32>
    %17 = arith.truncf %16 : vector<4x8x16xf32> to vector<4x8x16xbf16>
    %18 = vector.extract_strided_slice %13 {offsets = [0, 0, 0], sizes = [4, 8, 16], strides = [1, 1, 1]} : vector<4x8x32xf32> to vector<4x8x16xf32>
    %19 = arith.truncf %18 : vector<4x8x16xf32> to vector<4x8x16xbf16>
    %20 = vector.extract_strided_slice %15 {offsets = [0, 0, 0], sizes = [4, 8, 16], strides = [1, 1, 1]} : vector<4x8x32xf32> to vector<4x8x16xf32>
    %21 = arith.truncf %20 : vector<4x8x16xf32> to vector<4x8x16xbf16>
    "tpu.trace_start"() <{level = 10 : i32, message = "bqd,bkd->bqk"}> : () -> ()
    %cst_8 = arith.constant dense<0.000000e+00> : vector<4x8x8xf32>
    %22 = tpu.matmul %17, %19, %cst_8 {dimension_numbers = #tpu.dot_dimension_numbers<[2], [2], [1], [1], [0, 0, 0, 1, 1, 1], [0], [0]>} : vector<4x8x16xbf16>, vector<4x8x16xbf16>, vector<4x8x8xf32> -> vector<4x8x8xf32>
    "tpu.trace_stop"() : () -> ()
    %cst_9 = arith.constant 2.500000e-01 : f32
    %23 = vector.broadcast %cst_9 : f32 to vector<4x8x8xf32>
    %24 = arith.mulf %22, %23 : vector<4x8x8xf32>
    %cst_10 = arith.constant dense<0xFF800000> : vector<4x8xf32>
    %25 = vector.multi_reduction <maximumf>, %24, %cst_10 [2] : vector<4x8x8xf32> to vector<4x8xf32>
    %cst_11 = arith.constant 0xFF800000 : f32
    %26 = vector.broadcast %cst_11 : f32 to vector<4x8xf32>
    %27 = arith.maximumf %26, %25 : vector<4x8xf32>
    %28 = vector.shape_cast %27 : vector<4x8xf32> to vector<4x8x1xf32>
    %29 = vector.broadcast %28 : vector<4x8x1xf32> to vector<4x8x8xf32>
    %30 = arith.subf %24, %29 : vector<4x8x8xf32>
    %31 = math.exp %30 : vector<4x8x8xf32>
    %cst_12 = arith.constant dense<0.000000e+00> : vector<4x8xf32>
    %32 = vector.multi_reduction <add>, %31, %cst_12 [2] : vector<4x8x8xf32> to vector<4x8xf32>
    %33 = vector.shape_cast %32 : vector<4x8xf32> to vector<4x8x1xf32>
    %34 = vector.broadcast %33 : vector<4x8x1xf32> to vector<4x8x8xf32>
    %35 = arith.divf %31, %34 : vector<4x8x8xf32>
    %36 = arith.truncf %35 : vector<4x8x8xf32> to vector<4x8x8xbf16>
    "tpu.trace_start"() <{level = 10 : i32, message = "bqk,bkd->bqd"}> : () -> ()
    %cst_13 = arith.constant dense<0.000000e+00> : vector<4x8x16xf32>
    %37 = tpu.matmul %36, %21, %cst_13 {dimension_numbers = #tpu.dot_dimension_numbers<[2], [1], [1], [2], [0, 0, 0, 1, 1, 2], [0], [0]>} : vector<4x8x8xbf16>, vector<4x8x16xbf16>, vector<4x8x16xf32> -> vector<4x8x16xf32>
    "tpu.trace_stop"() : () -> ()
    %38 = vector.extract_strided_slice %11 {offsets = [0, 0, 16], sizes = [4, 8, 16], strides = [1, 1, 1]} : vector<4x8x32xf32> to vector<4x8x16xf32>
    %39 = arith.truncf %38 : vector<4x8x16xf32> to vector<4x8x16xbf16>
    %40 = vector.extract_strided_slice %13 {offsets = [0, 0, 16], sizes = [4, 8, 16], strides = [1, 1, 1]} : vector<4x8x32xf32> to vector<4x8x16xf32>
    %41 = arith.truncf %40 : vector<4x8x16xf32> to vector<4x8x16xbf16>
    %42 = vector.extract_strided_slice %15 {offsets = [0, 0, 16], sizes = [4, 8, 16], strides = [1, 1, 1]} : vector<4x8x32xf32> to vector<4x8x16xf32>
    %43 = arith.truncf %42 : vector<4x8x16xf32> to vector<4x8x16xbf16>
    "tpu.trace_start"() <{level = 10 : i32, message = "bqd,bkd->bqk"}> : () -> ()
    %cst_14 = arith.constant dense<0.000000e+00> : vector<4x8x8xf32>
    %44 = tpu.matmul %39, %41, %cst_14 {dimension_numbers = #tpu.dot_dimension_numbers<[2], [2], [1], [1], [0, 0, 0, 1, 1, 1], [0], [0]>} : vector<4x8x16xbf16>, vector<4x8x16xbf16>, vector<4x8x8xf32> -> vector<4x8x8xf32>
    "tpu.trace_stop"() : () -> ()
    %cst_15 = arith.constant 2.500000e-01 : f32
    %45 = vector.broadcast %cst_15 : f32 to vector<4x8x8xf32>
    %46 = arith.mulf %44, %45 : vector<4x8x8xf32>
    %cst_16 = arith.constant dense<0xFF800000> : vector<4x8xf32>
    %47 = vector.multi_reduction <maximumf>, %46, %cst_16 [2] : vector<4x8x8xf32> to vector<4x8xf32>
    %cst_17 = arith.constant 0xFF800000 : f32
    %48 = vector.broadcast %cst_17 : f32 to vector<4x8xf32>
    %49 = arith.maximumf %48, %47 : vector<4x8xf32>
    %50 = vector.shape_cast %49 : vector<4x8xf32> to vector<4x8x1xf32>
    %51 = vector.broadcast %50 : vector<4x8x1xf32> to vector<4x8x8xf32>
    %52 = arith.subf %46, %51 : vector<4x8x8xf32>
    %53 = math.exp %52 : vector<4x8x8xf32>
    %cst_18 = arith.constant dense<0.000000e+00> : vector<4x8xf32>
    %54 = vector.multi_reduction <add>, %53, %cst_18 [2] : vector<4x8x8xf32> to vector<4x8xf32>
    %55 = vector.shape_cast %54 : vector<4x8xf32> to vector<4x8x1xf32>
    %56 = vector.broadcast %55 : vector<4x8x1xf32> to vector<4x8x8xf32>
    %57 = arith.divf %53, %56 : vector<4x8x8xf32>
    %58 = arith.truncf %57 : vector<4x8x8xf32> to vector<4x8x8xbf16>
    "tpu.trace_start"() <{level = 10 : i32, message = "bqk,bkd->bqd"}> : () -> ()
    %cst_19 = arith.constant dense<0.000000e+00> : vector<4x8x16xf32>
    %59 = tpu.matmul %58, %43, %cst_19 {dimension_numbers = #tpu.dot_dimension_numbers<[2], [1], [1], [2], [0, 0, 0, 1, 1, 2], [0], [0]>} : vector<4x8x8xbf16>, vector<4x8x16xbf16>, vector<4x8x16xf32> -> vector<4x8x16xf32>
    "tpu.trace_stop"() : () -> ()
    %60 = tpu.concatenate %37, %59 in 2 : vector<4x8x16xf32>, vector<4x8x16xf32> -> vector<4x8x32xf32>
    %61 = vector.shape_cast %60 : vector<4x8x32xf32> to vector<32x32xf32>
    %62 = arith.truncf %61 : vector<32x32xf32> to vector<32x32xbf16>
    %c0_20 = arith.constant 0 : index
    %c0_21 = arith.constant 0 : index
    %c0_22 = arith.constant 0 : index
    %63 = vector.load %arg3[%c0_20, %c0_21, %c0_22] : memref<2x32x32xbf16, #tpu.memory_space<vmem>>, vector<1x32x32xbf16>
    %64 = vector.shape_cast %63 : vector<1x32x32xbf16> to vector<32x32xbf16>
    %cst_23 = arith.constant dense<0.000000e+00> : vector<32x32xf32>
    %65 = tpu.matmul %62, %64, %cst_23 {dimension_numbers = #tpu.dot_dimension_numbers<[1], [0], [0], [1], [0, 0, 1, 1], [], []>} : vector<32x32xbf16>, vector<32x32xbf16>, vector<32x32xf32> -> vector<32x32xf32>
    %c0_24 = arith.constant 0 : index
    %c0_25 = arith.constant 0 : index
    %c0_26 = arith.constant 0 : index
    %66 = vector.load %arg4[%c0_24, %c0_25, %c0_26] : memref<2x1x32xf32, #tpu.memory_space<vmem>>, vector<1x1x32xf32>
    %67 = vector.shape_cast %66 : vector<1x1x32xf32> to vector<1x32xf32>
    %68 = vector.broadcast %67 : vector<1x32xf32> to vector<32x32xf32>
    %69 = arith.addf %65, %68 : vector<32x32xf32>
    %70 = arith.addf %1, %69 : vector<32x32xf32>
    %c0_27 = arith.constant 0 : index
    %c0_28 = arith.constant 0 : index
    %c0_29 = arith.constant 0 : index
    %71 = vector.load %arg5[%c0_27, %c0_28, %c0_29] : memref<2x1x32xf32, #tpu.memory_space<vmem>>, vector<1x1x32xf32>
    %72 = vector.shape_cast %71 : vector<1x1x32xf32> to vector<1x32xf32>
    %c0_30 = arith.constant 0 : index
    %c0_31 = arith.constant 0 : index
    %c0_32 = arith.constant 0 : index
    %73 = vector.load %arg6[%c0_30, %c0_31, %c0_32] : memref<2x1x32xf32, #tpu.memory_space<vmem>>, vector<1x1x32xf32>
    %74 = vector.shape_cast %73 : vector<1x1x32xf32> to vector<1x32xf32>
    %cst_33 = arith.constant dense<0.000000e+00> : vector<32xf32>
    %75 = vector.multi_reduction <add>, %70, %cst_33 [1] : vector<32x32xf32> to vector<32xf32>
    %76 = vector.shape_cast %75 : vector<32xf32> to vector<32x1xf32>
    %cst_34 = arith.constant 3.200000e+01 : f32
    %77 = vector.broadcast %cst_34 : f32 to vector<32x1xf32>
    %78 = arith.divf %76, %77 : vector<32x1xf32>
    %79 = vector.broadcast %78 : vector<32x1xf32> to vector<32x32xf32>
    %80 = arith.subf %70, %79 : vector<32x32xf32>
    %81 = arith.mulf %80, %80 : vector<32x32xf32>
    %cst_35 = arith.constant dense<0.000000e+00> : vector<32xf32>
    %82 = vector.multi_reduction <add>, %81, %cst_35 [1] : vector<32x32xf32> to vector<32xf32>
    %83 = vector.shape_cast %82 : vector<32xf32> to vector<32x1xf32>
    %cst_36 = arith.constant 3.200000e+01 : f32
    %84 = vector.broadcast %cst_36 : f32 to vector<32x1xf32>
    %85 = arith.divf %83, %84 : vector<32x1xf32>
    %86 = vector.broadcast %78 : vector<32x1xf32> to vector<32x32xf32>
    %87 = arith.subf %70, %86 : vector<32x32xf32>
    %cst_37 = arith.constant 9.99999996E-13 : f32
    %88 = vector.broadcast %cst_37 : f32 to vector<32x1xf32>
    %89 = arith.addf %85, %88 : vector<32x1xf32>
    %90 = math.rsqrt %89 : vector<32x1xf32>
    %91 = vector.broadcast %90 : vector<32x1xf32> to vector<32x32xf32>
    %92 = arith.mulf %87, %91 : vector<32x32xf32>
    %93 = vector.broadcast %72 : vector<1x32xf32> to vector<32x32xf32>
    %94 = arith.mulf %92, %93 : vector<32x32xf32>
    %95 = vector.broadcast %74 : vector<1x32xf32> to vector<32x32xf32>
    %96 = arith.addf %94, %95 : vector<32x32xf32>
    %97 = arith.truncf %96 : vector<32x32xf32> to vector<32x32xbf16>
    %c0_38 = arith.constant 0 : index
    %c0_39 = arith.constant 0 : index
    %c0_40 = arith.constant 0 : index
    %98 = vector.load %arg7[%c0_38, %c0_39, %c0_40] : memref<2x32x64xbf16, #tpu.memory_space<vmem>>, vector<1x32x64xbf16>
    %99 = vector.shape_cast %98 : vector<1x32x64xbf16> to vector<32x64xbf16>
    %cst_41 = arith.constant dense<0.000000e+00> : vector<32x64xf32>
    %100 = tpu.matmul %97, %99, %cst_41 {dimension_numbers = #tpu.dot_dimension_numbers<[1], [0], [0], [1], [0, 0, 1, 1], [], []>} : vector<32x32xbf16>, vector<32x64xbf16>, vector<32x64xf32> -> vector<32x64xf32>
    %c0_42 = arith.constant 0 : index
    %c0_43 = arith.constant 0 : index
    %c0_44 = arith.constant 0 : index
    %101 = vector.load %arg8[%c0_42, %c0_43, %c0_44] : memref<2x1x64xf32, #tpu.memory_space<vmem>>, vector<1x1x64xf32>
    %102 = vector.shape_cast %101 : vector<1x1x64xf32> to vector<1x64xf32>
    %103 = vector.broadcast %102 : vector<1x64xf32> to vector<32x64xf32>
    %104 = arith.addf %100, %103 : vector<32x64xf32>
    %105 = arith.mulf %104, %104 : vector<32x64xf32>
    %106 = arith.mulf %104, %105 : vector<32x64xf32>
    %cst_45 = arith.constant 4.471500e-02 : f32
    %107 = vector.broadcast %cst_45 : f32 to vector<32x64xf32>
    %108 = arith.mulf %107, %106 : vector<32x64xf32>
    %109 = arith.addf %104, %108 : vector<32x64xf32>
    %cst_46 = arith.constant 0.797884583 : f32
    %110 = vector.broadcast %cst_46 : f32 to vector<32x64xf32>
    %111 = arith.mulf %110, %109 : vector<32x64xf32>
    %112 = math.tanh %111 : vector<32x64xf32>
    %cst_47 = arith.constant 1.000000e+00 : f32
    %113 = vector.broadcast %cst_47 : f32 to vector<32x64xf32>
    %114 = arith.addf %113, %112 : vector<32x64xf32>
    %cst_48 = arith.constant 5.000000e-01 : f32
    %115 = vector.broadcast %cst_48 : f32 to vector<32x64xf32>
    %116 = arith.mulf %115, %114 : vector<32x64xf32>
    %117 = arith.mulf %104, %116 : vector<32x64xf32>
    %118 = arith.truncf %117 : vector<32x64xf32> to vector<32x64xbf16>
    %c0_49 = arith.constant 0 : index
    %c0_50 = arith.constant 0 : index
    %c0_51 = arith.constant 0 : index
    %119 = vector.load %arg9[%c0_49, %c0_50, %c0_51] : memref<2x64x32xbf16, #tpu.memory_space<vmem>>, vector<1x64x32xbf16>
    %120 = vector.shape_cast %119 : vector<1x64x32xbf16> to vector<64x32xbf16>
    %cst_52 = arith.constant dense<0.000000e+00> : vector<32x32xf32>
    %121 = tpu.matmul %118, %120, %cst_52 {dimension_numbers = #tpu.dot_dimension_numbers<[1], [0], [0], [1], [0, 0, 1, 1], [], []>} : vector<32x64xbf16>, vector<64x32xbf16>, vector<32x32xf32> -> vector<32x32xf32>
    %c0_53 = arith.constant 0 : index
    %c0_54 = arith.constant 0 : index
    %c0_55 = arith.constant 0 : index
    %122 = vector.load %arg10[%c0_53, %c0_54, %c0_55] : memref<2x1x32xf32, #tpu.memory_space<vmem>>, vector<1x1x32xf32>
    %123 = vector.shape_cast %122 : vector<1x1x32xf32> to vector<1x32xf32>
    %124 = vector.broadcast %123 : vector<1x32xf32> to vector<32x32xf32>
    %125 = arith.addf %121, %124 : vector<32x32xf32>
    %126 = arith.addf %96, %125 : vector<32x32xf32>
    %c0_56 = arith.constant 0 : index
    %c0_57 = arith.constant 0 : index
    %c0_58 = arith.constant 0 : index
    %127 = vector.load %arg11[%c0_56, %c0_57, %c0_58] : memref<2x1x32xf32, #tpu.memory_space<vmem>>, vector<1x1x32xf32>
    %128 = vector.shape_cast %127 : vector<1x1x32xf32> to vector<1x32xf32>
    %c0_59 = arith.constant 0 : index
    %c0_60 = arith.constant 0 : index
    %c0_61 = arith.constant 0 : index
    %129 = vector.load %arg12[%c0_59, %c0_60, %c0_61] : memref<2x1x32xf32, #tpu.memory_space<vmem>>, vector<1x1x32xf32>
    %130 = vector.shape_cast %129 : vector<1x1x32xf32> to vector<1x32xf32>
    %cst_62 = arith.constant dense<0.000000e+00> : vector<32xf32>
    %131 = vector.multi_reduction <add>, %126, %cst_62 [1] : vector<32x32xf32> to vector<32xf32>
    %132 = vector.shape_cast %131 : vector<32xf32> to vector<32x1xf32>
    %cst_63 = arith.constant 3.200000e+01 : f32
    %133 = vector.broadcast %cst_63 : f32 to vector<32x1xf32>
    %134 = arith.divf %132, %133 : vector<32x1xf32>
    %135 = vector.broadcast %134 : vector<32x1xf32> to vector<32x32xf32>
    %136 = arith.subf %126, %135 : vector<32x32xf32>
    %137 = arith.mulf %136, %136 : vector<32x32xf32>
    %cst_64 = arith.constant dense<0.000000e+00> : vector<32xf32>
    %138 = vector.multi_reduction <add>, %137, %cst_64 [1] : vector<32x32xf32> to vector<32xf32>
    %139 = vector.shape_cast %138 : vector<32xf32> to vector<32x1xf32>
    %cst_65 = arith.constant 3.200000e+01 : f32
    %140 = vector.broadcast %cst_65 : f32 to vector<32x1xf32>
    %141 = arith.divf %139, %140 : vector<32x1xf32>
    %142 = vector.broadcast %134 : vector<32x1xf32> to vector<32x32xf32>
    %143 = arith.subf %126, %142 : vector<32x32xf32>
    %cst_66 = arith.constant 9.99999996E-13 : f32
    %144 = vector.broadcast %cst_66 : f32 to vector<32x1xf32>
    %145 = arith.addf %141, %144 : vector<32x1xf32>
    %146 = math.rsqrt %145 : vector<32x1xf32>
    %147 = vector.broadcast %146 : vector<32x1xf32> to vector<32x32xf32>
    %148 = arith.mulf %143, %147 : vector<32x32xf32>
    %149 = vector.broadcast %128 : vector<1x32xf32> to vector<32x32xf32>
    %150 = arith.mulf %148, %149 : vector<32x32xf32>
    %151 = vector.broadcast %130 : vector<1x32xf32> to vector<32x32xf32>
    %152 = arith.addf %150, %151 : vector<32x32xf32>
    %153 = arith.truncf %152 : vector<32x32xf32> to vector<32x32xbf16>
    %c1 = arith.constant 1 : index
    %c0_67 = arith.constant 0 : index
    %c0_68 = arith.constant 0 : index
    %154 = vector.load %arg1[%c1, %c0_67, %c0_68] : memref<2x32x96xbf16, #tpu.memory_space<vmem>>, vector<1x32x96xbf16>
    %155 = vector.shape_cast %154 : vector<1x32x96xbf16> to vector<32x96xbf16>
    %cst_69 = arith.constant dense<0.000000e+00> : vector<32x96xf32>
    %156 = tpu.matmul %153, %155, %cst_69 {dimension_numbers = #tpu.dot_dimension_numbers<[1], [0], [0], [1], [0, 0, 1, 1], [], []>} : vector<32x32xbf16>, vector<32x96xbf16>, vector<32x96xf32> -> vector<32x96xf32>
    %c1_70 = arith.constant 1 : index
    %c0_71 = arith.constant 0 : index
    %c0_72 = arith.constant 0 : index
    %157 = vector.load %arg2[%c1_70, %c0_71, %c0_72] : memref<2x1x96xf32, #tpu.memory_space<vmem>>, vector<1x1x96xf32>
    %158 = vector.shape_cast %157 : vector<1x1x96xf32> to vector<1x96xf32>
    %159 = vector.broadcast %158 : vector<1x96xf32> to vector<32x96xf32>
    %160 = arith.addf %156, %159 : vector<32x96xf32>
    %161 = vector.extract_strided_slice %160 {offsets = [0, 0], sizes = [32, 32], strides = [1, 1]} : vector<32x96xf32> to vector<32x32xf32>
    %162 = vector.shape_cast %161 : vector<32x32xf32> to vector<4x8x32xf32>
    %163 = vector.extract_strided_slice %160 {offsets = [0, 32], sizes = [32, 32], strides = [1, 1]} : vector<32x96xf32> to vector<32x32xf32>
    %164 = vector.shape_cast %163 : vector<32x32xf32> to vector<4x8x32xf32>
    %165 = vector.extract_strided_slice %160 {offsets = [0, 64], sizes = [32, 32], strides = [1, 1]} : vector<32x96xf32> to vector<32x32xf32>
    %166 = vector.shape_cast %165 : vector<32x32xf32> to vector<4x8x32xf32>
    %167 = vector.extract_strided_slice %162 {offsets = [0, 0, 0], sizes = [4, 8, 16], strides = [1, 1, 1]} : vector<4x8x32xf32> to vector<4x8x16xf32>
    %168 = arith.truncf %167 : vector<4x8x16xf32> to vector<4x8x16xbf16>
    %169 = vector.extract_strided_slice %164 {offsets = [0, 0, 0], sizes = [4, 8, 16], strides = [1, 1, 1]} : vector<4x8x32xf32> to vector<4x8x16xf32>
    %170 = arith.truncf %169 : vector<4x8x16xf32> to vector<4x8x16xbf16>
    %171 = vector.extract_strided_slice %166 {offsets = [0, 0, 0], sizes = [4, 8, 16], strides = [1, 1, 1]} : vector<4x8x32xf32> to vector<4x8x16xf32>
    %172 = arith.truncf %171 : vector<4x8x16xf32> to vector<4x8x16xbf16>
    "tpu.trace_start"() <{level = 10 : i32, message = "bqd,bkd->bqk"}> : () -> ()
    %cst_73 = arith.constant dense<0.000000e+00> : vector<4x8x8xf32>
    %173 = tpu.matmul %168, %170, %cst_73 {dimension_numbers = #tpu.dot_dimension_numbers<[2], [2], [1], [1], [0, 0, 0, 1, 1, 1], [0], [0]>} : vector<4x8x16xbf16>, vector<4x8x16xbf16>, vector<4x8x8xf32> -> vector<4x8x8xf32>
    "tpu.trace_stop"() : () -> ()
    %cst_74 = arith.constant 2.500000e-01 : f32
    %174 = vector.broadcast %cst_74 : f32 to vector<4x8x8xf32>
    %175 = arith.mulf %173, %174 : vector<4x8x8xf32>
    %cst_75 = arith.constant dense<0xFF800000> : vector<4x8xf32>
    %176 = vector.multi_reduction <maximumf>, %175, %cst_75 [2] : vector<4x8x8xf32> to vector<4x8xf32>
    %cst_76 = arith.constant 0xFF800000 : f32
    %177 = vector.broadcast %cst_76 : f32 to vector<4x8xf32>
    %178 = arith.maximumf %177, %176 : vector<4x8xf32>
    %179 = vector.shape_cast %178 : vector<4x8xf32> to vector<4x8x1xf32>
    %180 = vector.broadcast %179 : vector<4x8x1xf32> to vector<4x8x8xf32>
    %181 = arith.subf %175, %180 : vector<4x8x8xf32>
    %182 = math.exp %181 : vector<4x8x8xf32>
    %cst_77 = arith.constant dense<0.000000e+00> : vector<4x8xf32>
    %183 = vector.multi_reduction <add>, %182, %cst_77 [2] : vector<4x8x8xf32> to vector<4x8xf32>
    %184 = vector.shape_cast %183 : vector<4x8xf32> to vector<4x8x1xf32>
    %185 = vector.broadcast %184 : vector<4x8x1xf32> to vector<4x8x8xf32>
    %186 = arith.divf %182, %185 : vector<4x8x8xf32>
    %187 = arith.truncf %186 : vector<4x8x8xf32> to vector<4x8x8xbf16>
    "tpu.trace_start"() <{level = 10 : i32, message = "bqk,bkd->bqd"}> : () -> ()
    %cst_78 = arith.constant dense<0.000000e+00> : vector<4x8x16xf32>
    %188 = tpu.matmul %187, %172, %cst_78 {dimension_numbers = #tpu.dot_dimension_numbers<[2], [1], [1], [2], [0, 0, 0, 1, 1, 2], [0], [0]>} : vector<4x8x8xbf16>, vector<4x8x16xbf16>, vector<4x8x16xf32> -> vector<4x8x16xf32>
    "tpu.trace_stop"() : () -> ()
    %189 = vector.extract_strided_slice %162 {offsets = [0, 0, 16], sizes = [4, 8, 16], strides = [1, 1, 1]} : vector<4x8x32xf32> to vector<4x8x16xf32>
    %190 = arith.truncf %189 : vector<4x8x16xf32> to vector<4x8x16xbf16>
    %191 = vector.extract_strided_slice %164 {offsets = [0, 0, 16], sizes = [4, 8, 16], strides = [1, 1, 1]} : vector<4x8x32xf32> to vector<4x8x16xf32>
    %192 = arith.truncf %191 : vector<4x8x16xf32> to vector<4x8x16xbf16>
    %193 = vector.extract_strided_slice %166 {offsets = [0, 0, 16], sizes = [4, 8, 16], strides = [1, 1, 1]} : vector<4x8x32xf32> to vector<4x8x16xf32>
    %194 = arith.truncf %193 : vector<4x8x16xf32> to vector<4x8x16xbf16>
    "tpu.trace_start"() <{level = 10 : i32, message = "bqd,bkd->bqk"}> : () -> ()
    %cst_79 = arith.constant dense<0.000000e+00> : vector<4x8x8xf32>
    %195 = tpu.matmul %190, %192, %cst_79 {dimension_numbers = #tpu.dot_dimension_numbers<[2], [2], [1], [1], [0, 0, 0, 1, 1, 1], [0], [0]>} : vector<4x8x16xbf16>, vector<4x8x16xbf16>, vector<4x8x8xf32> -> vector<4x8x8xf32>
    "tpu.trace_stop"() : () -> ()
    %cst_80 = arith.constant 2.500000e-01 : f32
    %196 = vector.broadcast %cst_80 : f32 to vector<4x8x8xf32>
    %197 = arith.mulf %195, %196 : vector<4x8x8xf32>
    %cst_81 = arith.constant dense<0xFF800000> : vector<4x8xf32>
    %198 = vector.multi_reduction <maximumf>, %197, %cst_81 [2] : vector<4x8x8xf32> to vector<4x8xf32>
    %cst_82 = arith.constant 0xFF800000 : f32
    %199 = vector.broadcast %cst_82 : f32 to vector<4x8xf32>
    %200 = arith.maximumf %199, %198 : vector<4x8xf32>
    %201 = vector.shape_cast %200 : vector<4x8xf32> to vector<4x8x1xf32>
    %202 = vector.broadcast %201 : vector<4x8x1xf32> to vector<4x8x8xf32>
    %203 = arith.subf %197, %202 : vector<4x8x8xf32>
    %204 = math.exp %203 : vector<4x8x8xf32>
    %cst_83 = arith.constant dense<0.000000e+00> : vector<4x8xf32>
    %205 = vector.multi_reduction <add>, %204, %cst_83 [2] : vector<4x8x8xf32> to vector<4x8xf32>
    %206 = vector.shape_cast %205 : vector<4x8xf32> to vector<4x8x1xf32>
    %207 = vector.broadcast %206 : vector<4x8x1xf32> to vector<4x8x8xf32>
    %208 = arith.divf %204, %207 : vector<4x8x8xf32>
    %209 = arith.truncf %208 : vector<4x8x8xf32> to vector<4x8x8xbf16>
    "tpu.trace_start"() <{level = 10 : i32, message = "bqk,bkd->bqd"}> : () -> ()
    %cst_84 = arith.constant dense<0.000000e+00> : vector<4x8x16xf32>
    %210 = tpu.matmul %209, %194, %cst_84 {dimension_numbers = #tpu.dot_dimension_numbers<[2], [1], [1], [2], [0, 0, 0, 1, 1, 2], [0], [0]>} : vector<4x8x8xbf16>, vector<4x8x16xbf16>, vector<4x8x16xf32> -> vector<4x8x16xf32>
    "tpu.trace_stop"() : () -> ()
    %211 = tpu.concatenate %188, %210 in 2 : vector<4x8x16xf32>, vector<4x8x16xf32> -> vector<4x8x32xf32>
    %212 = vector.shape_cast %211 : vector<4x8x32xf32> to vector<32x32xf32>
    %213 = arith.truncf %212 : vector<32x32xf32> to vector<32x32xbf16>
    %c1_85 = arith.constant 1 : index
    %c0_86 = arith.constant 0 : index
    %c0_87 = arith.constant 0 : index
    %214 = vector.load %arg3[%c1_85, %c0_86, %c0_87] : memref<2x32x32xbf16, #tpu.memory_space<vmem>>, vector<1x32x32xbf16>
    %215 = vector.shape_cast %214 : vector<1x32x32xbf16> to vector<32x32xbf16>
    %cst_88 = arith.constant dense<0.000000e+00> : vector<32x32xf32>
    %216 = tpu.matmul %213, %215, %cst_88 {dimension_numbers = #tpu.dot_dimension_numbers<[1], [0], [0], [1], [0, 0, 1, 1], [], []>} : vector<32x32xbf16>, vector<32x32xbf16>, vector<32x32xf32> -> vector<32x32xf32>
    %c1_89 = arith.constant 1 : index
    %c0_90 = arith.constant 0 : index
    %c0_91 = arith.constant 0 : index
    %217 = vector.load %arg4[%c1_89, %c0_90, %c0_91] : memref<2x1x32xf32, #tpu.memory_space<vmem>>, vector<1x1x32xf32>
    %218 = vector.shape_cast %217 : vector<1x1x32xf32> to vector<1x32xf32>
    %219 = vector.broadcast %218 : vector<1x32xf32> to vector<32x32xf32>
    %220 = arith.addf %216, %219 : vector<32x32xf32>
    %221 = arith.addf %152, %220 : vector<32x32xf32>
    %c1_92 = arith.constant 1 : index
    %c0_93 = arith.constant 0 : index
    %c0_94 = arith.constant 0 : index
    %222 = vector.load %arg5[%c1_92, %c0_93, %c0_94] : memref<2x1x32xf32, #tpu.memory_space<vmem>>, vector<1x1x32xf32>
    %223 = vector.shape_cast %222 : vector<1x1x32xf32> to vector<1x32xf32>
    %c1_95 = arith.constant 1 : index
    %c0_96 = arith.constant 0 : index
    %c0_97 = arith.constant 0 : index
    %224 = vector.load %arg6[%c1_95, %c0_96, %c0_97] : memref<2x1x32xf32, #tpu.memory_space<vmem>>, vector<1x1x32xf32>
    %225 = vector.shape_cast %224 : vector<1x1x32xf32> to vector<1x32xf32>
    %cst_98 = arith.constant dense<0.000000e+00> : vector<32xf32>
    %226 = vector.multi_reduction <add>, %221, %cst_98 [1] : vector<32x32xf32> to vector<32xf32>
    %227 = vector.shape_cast %226 : vector<32xf32> to vector<32x1xf32>
    %cst_99 = arith.constant 3.200000e+01 : f32
    %228 = vector.broadcast %cst_99 : f32 to vector<32x1xf32>
    %229 = arith.divf %227, %228 : vector<32x1xf32>
    %230 = vector.broadcast %229 : vector<32x1xf32> to vector<32x32xf32>
    %231 = arith.subf %221, %230 : vector<32x32xf32>
    %232 = arith.mulf %231, %231 : vector<32x32xf32>
    %cst_100 = arith.constant dense<0.000000e+00> : vector<32xf32>
    %233 = vector.multi_reduction <add>, %232, %cst_100 [1] : vector<32x32xf32> to vector<32xf32>
    %234 = vector.shape_cast %233 : vector<32xf32> to vector<32x1xf32>
    %cst_101 = arith.constant 3.200000e+01 : f32
    %235 = vector.broadcast %cst_101 : f32 to vector<32x1xf32>
    %236 = arith.divf %234, %235 : vector<32x1xf32>
    %237 = vector.broadcast %229 : vector<32x1xf32> to vector<32x32xf32>
    %238 = arith.subf %221, %237 : vector<32x32xf32>
    %cst_102 = arith.constant 9.99999996E-13 : f32
    %239 = vector.broadcast %cst_102 : f32 to vector<32x1xf32>
    %240 = arith.addf %236, %239 : vector<32x1xf32>
    %241 = math.rsqrt %240 : vector<32x1xf32>
    %242 = vector.broadcast %241 : vector<32x1xf32> to vector<32x32xf32>
    %243 = arith.mulf %238, %242 : vector<32x32xf32>
    %244 = vector.broadcast %223 : vector<1x32xf32> to vector<32x32xf32>
    %245 = arith.mulf %243, %244 : vector<32x32xf32>
    %246 = vector.broadcast %225 : vector<1x32xf32> to vector<32x32xf32>
    %247 = arith.addf %245, %246 : vector<32x32xf32>
    %248 = arith.truncf %247 : vector<32x32xf32> to vector<32x32xbf16>
    %c1_103 = arith.constant 1 : index
    %c0_104 = arith.constant 0 : index
    %c0_105 = arith.constant 0 : index
    %249 = vector.load %arg7[%c1_103, %c0_104, %c0_105] : memref<2x32x64xbf16, #tpu.memory_space<vmem>>, vector<1x32x64xbf16>
    %250 = vector.shape_cast %249 : vector<1x32x64xbf16> to vector<32x64xbf16>
    %cst_106 = arith.constant dense<0.000000e+00> : vector<32x64xf32>
    %251 = tpu.matmul %248, %250, %cst_106 {dimension_numbers = #tpu.dot_dimension_numbers<[1], [0], [0], [1], [0, 0, 1, 1], [], []>} : vector<32x32xbf16>, vector<32x64xbf16>, vector<32x64xf32> -> vector<32x64xf32>
    %c1_107 = arith.constant 1 : index
    %c0_108 = arith.constant 0 : index
    %c0_109 = arith.constant 0 : index
    %252 = vector.load %arg8[%c1_107, %c0_108, %c0_109] : memref<2x1x64xf32, #tpu.memory_space<vmem>>, vector<1x1x64xf32>
    %253 = vector.shape_cast %252 : vector<1x1x64xf32> to vector<1x64xf32>
    %254 = vector.broadcast %253 : vector<1x64xf32> to vector<32x64xf32>
    %255 = arith.addf %251, %254 : vector<32x64xf32>
    %256 = arith.mulf %255, %255 : vector<32x64xf32>
    %257 = arith.mulf %255, %256 : vector<32x64xf32>
    %cst_110 = arith.constant 4.471500e-02 : f32
    %258 = vector.broadcast %cst_110 : f32 to vector<32x64xf32>
    %259 = arith.mulf %258, %257 : vector<32x64xf32>
    %260 = arith.addf %255, %259 : vector<32x64xf32>
    %cst_111 = arith.constant 0.797884583 : f32
    %261 = vector.broadcast %cst_111 : f32 to vector<32x64xf32>
    %262 = arith.mulf %261, %260 : vector<32x64xf32>
    %263 = math.tanh %262 : vector<32x64xf32>
    %cst_112 = arith.constant 1.000000e+00 : f32
    %264 = vector.broadcast %cst_112 : f32 to vector<32x64xf32>
    %265 = arith.addf %264, %263 : vector<32x64xf32>
    %cst_113 = arith.constant 5.000000e-01 : f32
    %266 = vector.broadcast %cst_113 : f32 to vector<32x64xf32>
    %267 = arith.mulf %266, %265 : vector<32x64xf32>
    %268 = arith.mulf %255, %267 : vector<32x64xf32>
    %269 = arith.truncf %268 : vector<32x64xf32> to vector<32x64xbf16>
    %c1_114 = arith.constant 1 : index
    %c0_115 = arith.constant 0 : index
    %c0_116 = arith.constant 0 : index
    %270 = vector.load %arg9[%c1_114, %c0_115, %c0_116] : memref<2x64x32xbf16, #tpu.memory_space<vmem>>, vector<1x64x32xbf16>
    %271 = vector.shape_cast %270 : vector<1x64x32xbf16> to vector<64x32xbf16>
    %cst_117 = arith.constant dense<0.000000e+00> : vector<32x32xf32>
    %272 = tpu.matmul %269, %271, %cst_117 {dimension_numbers = #tpu.dot_dimension_numbers<[1], [0], [0], [1], [0, 0, 1, 1], [], []>} : vector<32x64xbf16>, vector<64x32xbf16>, vector<32x32xf32> -> vector<32x32xf32>
    %c1_118 = arith.constant 1 : index
    %c0_119 = arith.constant 0 : index
    %c0_120 = arith.constant 0 : index
    %273 = vector.load %arg10[%c1_118, %c0_119, %c0_120] : memref<2x1x32xf32, #tpu.memory_space<vmem>>, vector<1x1x32xf32>
    %274 = vector.shape_cast %273 : vector<1x1x32xf32> to vector<1x32xf32>
    %275 = vector.broadcast %274 : vector<1x32xf32> to vector<32x32xf32>
    %276 = arith.addf %272, %275 : vector<32x32xf32>
    %277 = arith.addf %247, %276 : vector<32x32xf32>
    %c1_121 = arith.constant 1 : index
    %c0_122 = arith.constant 0 : index
    %c0_123 = arith.constant 0 : index
    %278 = vector.load %arg11[%c1_121, %c0_122, %c0_123] : memref<2x1x32xf32, #tpu.memory_space<vmem>>, vector<1x1x32xf32>
    %279 = vector.shape_cast %278 : vector<1x1x32xf32> to vector<1x32xf32>
    %c1_124 = arith.constant 1 : index
    %c0_125 = arith.constant 0 : index
    %c0_126 = arith.constant 0 : index
    %280 = vector.load %arg12[%c1_124, %c0_125, %c0_126] : memref<2x1x32xf32, #tpu.memory_space<vmem>>, vector<1x1x32xf32>
    %281 = vector.shape_cast %280 : vector<1x1x32xf32> to vector<1x32xf32>
    %cst_127 = arith.constant dense<0.000000e+00> : vector<32xf32>
    %282 = vector.multi_reduction <add>, %277, %cst_127 [1] : vector<32x32xf32> to vector<32xf32>
    %283 = vector.shape_cast %282 : vector<32xf32> to vector<32x1xf32>
    %cst_128 = arith.constant 3.200000e+01 : f32
    %284 = vector.broadcast %cst_128 : f32 to vector<32x1xf32>
    %285 = arith.divf %283, %284 : vector<32x1xf32>
    %286 = vector.broadcast %285 : vector<32x1xf32> to vector<32x32xf32>
    %287 = arith.subf %277, %286 : vector<32x32xf32>
    %288 = arith.mulf %287, %287 : vector<32x32xf32>
    %cst_129 = arith.constant dense<0.000000e+00> : vector<32xf32>
    %289 = vector.multi_reduction <add>, %288, %cst_129 [1] : vector<32x32xf32> to vector<32xf32>
    %290 = vector.shape_cast %289 : vector<32xf32> to vector<32x1xf32>
    %cst_130 = arith.constant 3.200000e+01 : f32
    %291 = vector.broadcast %cst_130 : f32 to vector<32x1xf32>
    %292 = arith.divf %290, %291 : vector<32x1xf32>
    %293 = vector.broadcast %285 : vector<32x1xf32> to vector<32x32xf32>
    %294 = arith.subf %277, %293 : vector<32x32xf32>
    %cst_131 = arith.constant 9.99999996E-13 : f32
    %295 = vector.broadcast %cst_131 : f32 to vector<32x1xf32>
    %296 = arith.addf %292, %295 : vector<32x1xf32>
    %297 = math.rsqrt %296 : vector<32x1xf32>
    %298 = vector.broadcast %297 : vector<32x1xf32> to vector<32x32xf32>
    %299 = arith.mulf %294, %298 : vector<32x32xf32>
    %300 = vector.broadcast %279 : vector<1x32xf32> to vector<32x32xf32>
    %301 = arith.mulf %299, %300 : vector<32x32xf32>
    %302 = vector.broadcast %281 : vector<1x32xf32> to vector<32x32xf32>
    %303 = arith.addf %301, %302 : vector<32x32xf32>
    %304 = vector.shape_cast %303 : vector<32x32xf32> to vector<4x8x32xf32>
    %c0_132 = arith.constant 0 : index
    %c0_133 = arith.constant 0 : index
    %c0_134 = arith.constant 0 : index
    %305 = vector.load %arg13[%c0_132, %c0_133, %c0_134] : memref<4x8x32xf32, #tpu.memory_space<vmem>>, vector<4x8x32xf32>
    tpu.vector_store %arg13[%c0_132, %c0_133, %c0_134], %304 {strides = array<i32>} : memref<4x8x32xf32, #tpu.memory_space<vmem>>, vector<4x8x32xf32>,
    return
  }
}

</mosaic_0001>

<bundles_post_ra>
// kernel: siamese_forward.1
= control target key start
LH: loop header
LB: loop body
LE: loop exit
PB: predicated region body
PF: predicated region fallthrough
CT: control target
= control target key end

     0   :  { %vm74_vm0 = vcmask 261120   ;;  %v3583_v8 = vmov 0.0   ;;  %vm3584_vm1 = vmmov 0   ;;  %vm137_vm2 = vcmask 130048   ;;  %s3586_s22 = smov 64   ;;  %s3587_s23 = smov 80   ;;  %s4241_s1 = inlined_call_operand.vmem [shape: bf16[2,32,96], index: 1, kind: input, shape index: {}]   ;;  %s4242_s0 = inlined_call_operand.vmem [shape: f32[4,8,32], index: 0, kind: input, shape index: {}]   ;;  %s4243_s2 = inlined_call_operand.vmem [shape: f32[2,1,96], index: 2, kind: input, shape index: {}]   ;;  %s4244_s3 = inlined_call_operand.vmem [shape: bf16[2,32,32], index: 3, kind: input, shape index: {}]   ;;  %s4245_s4 = inlined_call_operand.vmem [shape: f32[2,1,32], index: 4, kind: input, shape index: {}]   ;;  %s4246_s7 = inlined_call_operand.vmem [shape: bf16[2,32,64], index: 7, kind: input, shape index: {}]   ;;  %s4247_s5 = inlined_call_operand.vmem [shape: f32[2,1,32], index: 5, kind: input, shape index: {}]   ;;  %s4248_s6 = inlined_call_operand.vmem [shape: f32[2,1,32], index: 6, kind: input, shape index: {}]   ;;  %s4249_s9 = inlined_call_operand.vmem [shape: bf16[2,64,32], index: 9, kind: input, shape index: {}]   ;;  %s4250_s8 = inlined_call_operand.vmem [shape: f32[2,1,64], index: 8, kind: input, shape index: {}]   ;;  %s4251_s10 = inlined_call_operand.vmem [shape: f32[2,1,32], index: 10, kind: input, shape index: {}]   ;;  %s4252_s11 = inlined_call_operand.vmem [shape: f32[2,1,32], index: 11, kind: input, shape index: {}]   ;;  %s4253_s12 = inlined_call_operand.vmem [shape: f32[2,1,32], index: 12, kind: input, shape index: {}]   ;;  %s4254_s13 = inlined_call_operand.vmem [shape: f32[4,8,32], index: 13, kind: output, shape index: {}]  }
   0x1   :  { %v3451_v0 = vld [vmem:[%s4241_s1] sm:$0xff]   ;;  %v3452_v1 = vld [vmem:[%s4241_s1 + $0x8] sm:$0xff]   ;;  %v3680_v4 = vld [vmem:[%s4242_s0 + $0x10] sm:$0xff]  ;;  %3173 = vmatprep.subr.bf16.mxu0 %v3583_v8  ;;  %3175 = vmatprep.mubr.msk.bf16.mxu0 %vm3584_vm1, %v3583_v8  ;;  %vm335_vm3 = vcmask 64512   ;;  %vm389_vm4 = vcmask 1043456   ;;  %s3588_s24 = smov 112  }
   0x2   :  { %3159 = vmatprep.subr.bf16.mxu1 %v3451_v0  ;;  %v3670_v2 = vld [vmem:[%s4242_s0] sm:$0xff]  ;;  %v3675_v3 = vld [vmem:[%s4242_s0 + $0x8] sm:$0xff]  ;;  %v3687_v6 = vld [vmem:[%s4242_s0 + $0x18] sm:$0xff]  ;;  %s3585_s0 = smov 96   ;;  %s3589_s25 = smov 48   ;;  %vm1357_vm5 = vcmask 523264  }
   0x3   :  { %3160 = vmatpush3.bf16.msra.mxu1 %v3451_v0  ;;  %v49_v5 = vpack.c.bf16 %v3675_v3, %v3670_v2  ;;  %v50_v7 = vpack.c.bf16 %v3687_v6, %v3680_v4  ;;  %v2947_v9 = vld [vmem:[%s4243_s2] ss:$0 sm:$0xff]  ;;  %s3590_s30 = smov 16  }
   0x4   :  { %3161 = vmatprep.subr.bf16.mxu1 %v3452_v1 }
   0x5   :  { %3163 = vmatprep.mubr.msk.bf16.mxu1 %vm74_vm0, %v49_v5 }
   0x7   :  { %3162 = vmatpush3.bf16.msra.mxu1 %v3452_v1 }
   0x8   :  { %3167 = vmatprep.subr.bf16.mxu1 %v3583_v8 }
   0xa   :  { %3164 = vmatmul.mubr.msk.bf16.vlgmr.msra.gmra.mrb[0].mxu1 %vm74_vm0, %v50_v7 }
   0xb   :  { %3169 = vmatprep.mubr.msk.bf16.mxu1 %vm3584_vm1, %v3583_v8 }
  0xdd   :  { %v3165_v10 = vpop.f32.mrb[0].mxu1 }
  0xde   :  { %v124_v11 = vadd.f32 %v3165_v10, %v2947_v9  ;;  %v115_v12 = vpop.f32.mrb[1].mxu1 }
  0xdf   :  { %v116_v13 = vadd.f32 %v2947_v9, %v115_v12  ;;  %v3166_v14 = vpop.f32.mrb[2].mxu1 }
  0xe0   :  { %v3702_v15 = vpack.c.bf16 %v124_v11, %v124_v11  ;;  %v127_v16 = vadd.f32 %v3166_v14, %v2947_v9  ;;  %v118_v17 = vpop.f32.mrb[3].mxu1 }
  0xe1   :  { %v3704_v18 = vpack.c.bf16 %v116_v13, %v116_v13  ;;  %v119_v19 = vadd.f32 %v2947_v9, %v118_v17 }
  0xe2   :  { %234 = vrot.lane.b32.xlu1 %v3702_v15, %s3585_s0  ;;  %v3710_v20 = vpack.c.bf16 %v127_v16, %v127_v16 }
  0xe3   :  { %135 = vrot.lane.b32.xlu0 %v3704_v18, %s3585_s0  ;;  %v3712_v21 = vpack.c.bf16 %v119_v19, %v119_v19 }
  0xe6   :  { %283 = vrot.lane.b32.xlu1 %v3710_v20, %s3585_s0 }
  0xe7   :  { %185 = vrot.lane.b32.xlu0 %v3712_v21, %s3585_s0 }
 0x154   :  { %v235_v24 = vpop.permute.xlu1 %234 }
 0x155   :  { %v136_v22 = vpop.permute.xlu0 %135  ;;  %v240_v27 = vsel %vm137_vm2, %v235_v24, 0 }
 0x156   :  { %v142_v23 = vsel %vm137_vm2, %v136_v22, 0 }
 0x157   :  { %3168 = vmatpush3.bf16.xpose.msra.mxu1 %v142_v23 }
 0x158   :  { %3179 = vmatprep.subr.bf16.mxu1 %v3583_v8  ;;  %v284_v28 = vpop.permute.xlu1 %283 }
 0x159   :  { %v186_v25 = vpop.permute.xlu0 %185  ;;  %v289_v29 = vsel %vm137_vm2, %v284_v28, 0 }
 0x15a   :  { %v191_v26 = vsel %vm137_vm2, %v186_v25, 0 }
 0x15b   :  { %3174 = vmatpush3.bf16.xpose.msra.mxu0 %v191_v26 }
 0x15c   :  { %3185 = vmatprep.subr.bf16.mxu0 %v3583_v8 }
 0x15e   :  { %3170 = vmatmul.mubr.msk.bf16.vlgmr.msra.gmra.mrb[4].mxu1 %vm137_vm2, %v3704_v18 }
 0x15f   :  { %3180 = vmatpush3.bf16.xpose.msra.mxu1 %v240_v27  ;;  %3181 = vmatprep.mubr.msk.bf16.mxu1 %vm3584_vm1, %v3583_v8 }
 0x160   :  { %3191 = vmatprep.subr.bf16.mxu1 %v3583_v8 }
 0x162   :  { %3176 = vmatmul.mubr.msk.bf16.vlgmr.msra.gmra.mrb[0].mxu0 %vm137_vm2, %v3712_v21 }
 0x163   :  { %3186 = vmatpush3.bf16.xpose.msra.mxu0 %v289_v29  ;;  %3187 = vmatprep.mubr.msk.bf16.mxu0 %vm3584_vm1, %v3583_v8 }
 0x164   :  { %3197 = vmatprep.subr.bf16.mxu0 %v3583_v8 }
 0x166   :  { %3182 = vmatmul.mubr.msk.bf16.vlgmr.msra.gmra.mrb[8].mxu1 %vm137_vm2, %v3702_v15 }
 0x167   :  { %3193 = vmatprep.mubr.msk.bf16.mxu1 %vm3584_vm1, %v3583_v8 }
 0x16a   :  { %3188 = vmatmul.mubr.msk.bf16.vlgmr.msra.gmra.mrb[4].mxu0 %vm137_vm2, %v3710_v20 }
 0x16b   :  { %3199 = vmatprep.mubr.msk.bf16.mxu0 %vm3584_vm1, %v3583_v8 }
 0x231   :  { %v178_v30 = vpop.f32.mrb[4].mxu1 }
 0x232   :  { %v331_v31 = vmul.f32 0.25, %v178_v30  ;;  %v3171_v32 = vpop.f32.mrb[5].mxu1 }
 0x233   :  { %v181_v33 = vpop.f32.mrb[6].mxu1 }
 0x234   :  { %v3172_v34 = vpop.f32.mrb[7].mxu1  ;;  %v336_v35 = vsel %vm335_vm3, %v331_v31, -inf }
 0x235   :  { %337 = vmax.xlane.f32.xlu0 %v336_v35  ;;  %v227_v36 = vpop.f32.mrb[0].mxu0 }
 0x236   :  { %v332_v37 = vmul.f32 0.25, %v227_v36  ;;  %v3177_v38 = vpop.f32.mrb[1].mxu0 }
 0x237   :  { %v230_v39 = vpop.f32.mrb[2].mxu0 }
 0x238   :  { %v3178_v40 = vpop.f32.mrb[3].mxu0  ;;  %v339_v41 = vsel %vm335_vm3, %v332_v37, -inf }
 0x239   :  { %v276_v42 = vpop.f32.mrb[8].mxu1  ;;  %340 = vmax.xlane.f32.xlu1 %v339_v41 }
 0x23a   :  { %v333_v43 = vmul.f32 0.25, %v276_v42  ;;  %v3183_v44 = vpop.f32.mrb[9].mxu1 }
 0x23b   :  { %v279_v45 = vpop.f32.mrb[10].mxu1 }
 0x23c   :  { %v3184_v46 = vpop.f32.mrb[11].mxu1  ;;  %v342_v47 = vsel %vm335_vm3, %v333_v43, -inf }
 0x23d   :  { %343 = vmax.xlane.f32.xlu0 %v342_v47  ;;  %v325_v48 = vpop.f32.mrb[4].mxu0 }
 0x23e   :  { %v334_v49 = vmul.f32 0.25, %v325_v48  ;;  %v3189_v50 = vpop.f32.mrb[5].mxu0 }
 0x23f   :  { %v328_v51 = vpop.f32.mrb[6].mxu0 }
 0x240   :  { %v3190_v52 = vpop.f32.mrb[7].mxu0  ;;  %v345_v53 = vsel %vm335_vm3, %v334_v49, -inf }
 0x241   :  { %346 = vmax.xlane.f32.xlu0 %v345_v53 }
 0x24a   :  { %384 = vrot.lane.b32.xlu1 %v3704_v18, %s3586_s22 }
 0x2c2   :  { %v338_v54 = vpop.xlane.xlu0 %337 }
 0x2c3   :  { %v348_v55 = vsub.f32 %v331_v31, %v338_v54 }
 0x2c5   :  { %v352_v56 = vmul.f32 1.442695, %v348_v55 }
 0x2c6   :  { %v341_v57 = vpop.xlane.xlu1 %340 }
 0x2c7   :  { %3471 = vpow2.f32 %v352_v56  ;;  %v349_v58 = vsub.f32 %v332_v37, %v341_v57 }
 0x2c9   :  { %v354_v59 = vmul.f32 1.442695, %v349_v58 }
 0x2ca   :  { %v385_v60 = vpop.permute.xlu1 %384  ;;  %v344_v5 = vpop.xlane.xlu0 %343 }
 0x2cb   :  { %3473 = vpow2.f32 %v354_v59  ;;  %v391_v61 = vsel %vm389_vm4, %v385_v60, 0  ;;  %v350_v9 = vsub.f32 %v333_v43, %v344_v5 }
 0x2cc   :  { %3192 = vmatpush3.bf16.msra.mxu1 %v391_v61 }
 0x2cd   :  { %3203 = vmatprep.subr.bf16.mxu1 %v3583_v8  ;;  %v356_v11 = vmul.f32 1.442695, %v350_v9 }
 0x2ce   :  { %v347_v7 = vpop.xlane.xlu0 %346 }
 0x2cf   :  { %v351_v10 = vsub.f32 %v334_v49, %v347_v7  ;;  %3475 = vpow2.f32 %v356_v11 }
 0x2d1   :  { %v3472_v62 = vpop.eup %3471  ;;  %v358_v12 = vmul.f32 1.442695, %v351_v10 }
 0x2d2   :  { %v360_v63 = vsel %vm335_vm3, %v3472_v62, 0.0 }
 0x2d3   :  { %361 = vadd.xlane.f32.xlu1 %v360_v63  ;;  %3477 = vpow2.f32 %v358_v12 }
 0x2d5   :  { %v3474_v0 = vpop.eup %3473 }
 0x2d6   :  { %v363_v1 = vsel %vm335_vm3, %v3474_v0, 0.0 }
 0x2d7   :  { %364 = vadd.xlane.f32.xlu0 %v363_v1 }
 0x2d9   :  { %v3476_v13 = vpop.eup %3475 }
 0x2da   :  { %v366_v16 = vsel %vm335_vm3, %v3476_v13, 0.0 }
 0x2dd   :  { %v3478_v14 = vpop.eup %3477 }
 0x2de   :  { %v369_v17 = vsel %vm335_vm3, %v3478_v14, 0.0 }
 0x2e4   :  { %481 = vrot.lane.b32.xlu1 %v3702_v15, %s3586_s22 }
 0x2e8   :  { %529 = vrot.lane.b32.xlu1 %v3710_v20, %s3586_s22 }
 0x2ed   :  { %433 = vrot.lane.b32.xlu0 %v3712_v21, %s3586_s22 }
 0x30c   :  { %367 = vadd.xlane.f32.xlu1 %v366_v16  ;;  %370 = vadd.xlane.f32.xlu0 %v369_v17 }
 0x31d   :  { %629 = vrot.lane.b32.xlu1 %v3712_v21, %s3587_s23 }
 0x321   :  { %627 = vrot.lane.b32.xlu1 %v3712_v21, %s3588_s24 }
 0x322   :  { %579 = vrot.lane.b32.xlu0 %v3704_v18, %s3587_s23 }
 0x325   :  { %729 = vrot.lane.b32.xlu1 %v3710_v20, %s3587_s23 }
 0x326   :  { %577 = vrot.lane.b32.xlu0 %v3704_v18, %s3588_s24 }
 0x329   :  { %727 = vrot.lane.b32.xlu1 %v3710_v20, %s3588_s24 }
 0x32a   :  { %679 = vrot.lane.b32.xlu0 %v3702_v15, %s3587_s23 }
 0x32e   :  { %677 = vrot.lane.b32.xlu0 %v3702_v15, %s3588_s24 }
 0x360   :  { %v362_v19 = vpop.xlane.xlu1 %361 }
 0x361   :  { %3479 = vrcp.f32 %v362_v19 }
 0x364   :  { %v365_v22 = vpop.xlane.xlu0 %364  ;;  %v482_v26 = vpop.permute.xlu1 %481 }
 0x365   :  { %3481 = vrcp.f32 %v365_v22  ;;  %v487_v30 = vsel %vm389_vm4, %v482_v26, 0 }
 0x368   :  { %v434_v23 = vpop.permute.xlu0 %433  ;;  %v530_v32 = vpop.permute.xlu1 %529 }
 0x369   :  { %v439_v24 = vsel %vm389_vm4, %v434_v23, 0  ;;  %v535_v34 = vsel %vm389_vm4, %v530_v32, 0 }
 0x36a   :  { %3198 = vmatpush3.bf16.msra.mxu0 %v439_v24 }
 0x36b   :  { %v3480_v25 = vpop.eup %3479  ;;  %3209 = vmatprep.subr.bf16.mxu0 %v3583_v8 }
 0x36c   :  { %v373_v27 = vmul.f32 %v3480_v25, %v3472_v62 }
 0x36e   :  { %v380_v28 = vpack.c.bf16 %v373_v27, %v373_v27 }
 0x36f   :  { %v3482_v29 = vpop.eup %3481 }
 0x370   :  { %3194 = vmatmul.mubr.msk.bf16.vlgmr.msra.gmra.mrb[12].mxu1 %vm335_vm3, %v380_v28  ;;  %v375_v31 = vmul.f32 %v3482_v29, %v3474_v0 }
 0x371   :  { %3204 = vmatpush3.bf16.msra.mxu1 %v487_v30  ;;  %3205 = vmatprep.mubr.msk.bf16.mxu1 %vm3584_vm1, %v3583_v8 }
 0x372   :  { %v381_v33 = vpack.c.bf16 %v375_v31, %v375_v31  ;;  %3215 = vmatprep.subr.bf16.mxu1 %v3583_v8 }
 0x374   :  { %3200 = vmatmul.mubr.msk.bf16.vlgmr.msra.gmra.mrb[8].mxu0 %vm335_vm3, %v381_v33 }
 0x375   :  { %3210 = vmatpush3.bf16.msra.mxu0 %v535_v34  ;;  %3211 = vmatprep.mubr.msk.bf16.mxu0 %vm3584_vm1, %v3583_v8 }
 0x376   :  { %3221 = vmatprep.subr.bf16.mxu0 %v3583_v8 }
 0x399   :  { %v368_v35 = vpop.xlane.xlu1 %367  ;;  %v371_v36 = vpop.xlane.xlu0 %370 }
 0x39a   :  { %3483 = vrcp.f32 %v368_v35 }
 0x39b   :  { %3485 = vrcp.f32 %v371_v36 }
 0x39d   :  { %v580_v37 = vpop.permute.xlu0 %579  ;;  %v630_v38 = vpop.permute.xlu1 %629 }
 0x39e   :  { %v585_v46 = vsel %vm137_vm2, %v580_v37, 0  ;;  %v635_v48 = vsel %vm137_vm2, %v630_v38, 0 }
 0x3a1   :  { %v578_v44 = vpop.permute.xlu0 %577  ;;  %v628_v47 = vpop.permute.xlu1 %627 }
 0x3a4   :  { %v3484_v39 = vpop.eup %3483 }
 0x3a5   :  { %v3486_v40 = vpop.eup %3485  ;;  %v377_v41 = vmul.f32 %v3484_v39, %v3476_v13  ;;  %v680_v49 = vpop.permute.xlu0 %679 }
 0x3a6   :  { %v379_v42 = vmul.f32 %v3486_v40, %v3478_v14  ;;  %v730_v50 = vpop.permute.xlu1 %729  ;;  %v685_v51 = vsel %vm137_vm2, %v680_v49, 0 }
 0x3a7   :  { %v382_v43 = vpack.c.bf16 %v377_v41, %v377_v41  ;;  %v735_v52 = vsel %vm137_vm2, %v730_v50, 0 }
 0x3a8   :  { %v383_v45 = vpack.c.bf16 %v379_v42, %v379_v42 }
 0x3a9   :  { %3206 = vmatmul.mubr.msk.bf16.vlgmr.msra.gmra.mrb[16].mxu1 %vm335_vm3, %v382_v43  ;;  %v678_v53 = vpop.permute.xlu0 %677 }
 0x3aa   :  { %3212 = vmatmul.mubr.msk.bf16.vlgmr.msra.gmra.mrb[12].mxu0 %vm335_vm3, %v383_v45  ;;  %3216 = vmatpush3.bf16.xpose.msra.mxu1 %v585_v46  ;;  %v728_v54 = vpop.permute.xlu1 %727 }
 0x3ab   :  { %3222 = vmatpush3.bf16.xpose.msra.mxu0 %v635_v48  ;;  %3217 = vmatprep.mubr.msk.bf16.mxu1 %vm3584_vm1, %v3583_v8 }
 0x3ac   :  { %3223 = vmatprep.mubr.msk.bf16.mxu0 %vm3584_vm1, %v3583_v8  ;;  %3227 = vmatprep.subr.bf16.mxu1 %v3583_v8 }
 0x3ad   :  { %3233 = vmatprep.subr.bf16.mxu0 %v3583_v8 }
 0x3b1   :  { %3218 = vmatmul.mubr.msk.bf16.vlgmr.msra.gmra.mrb[20].mxu1 %vm137_vm2, %v578_v44 }
 0x3b2   :  { %3224 = vmatmul.mubr.msk.bf16.vlgmr.msra.gmra.mrb[16].mxu0 %vm137_vm2, %v628_v47  ;;  %3228 = vmatpush3.bf16.xpose.msra.mxu1 %v685_v51 }
 0x3b3   :  { %3234 = vmatpush3.bf16.xpose.msra.mxu0 %v735_v52  ;;  %3229 = vmatprep.mubr.msk.bf16.mxu1 %vm3584_vm1, %v3583_v8 }
 0x3b4   :  { %3235 = vmatprep.mubr.msk.bf16.mxu0 %vm3584_vm1, %v3583_v8  ;;  %3239 = vmatprep.subr.bf16.mxu1 %v3583_v8 }
 0x3b5   :  { %3245 = vmatprep.subr.bf16.mxu0 %v3583_v8 }
 0x3b9   :  { %3230 = vmatmul.mubr.msk.bf16.vlgmr.msra.gmra.mrb[24].mxu1 %vm137_vm2, %v678_v53 }
 0x3ba   :  { %3236 = vmatmul.mubr.msk.bf16.vlgmr.msra.gmra.mrb[20].mxu0 %vm137_vm2, %v728_v54  ;;  %3241 = vmatprep.mubr.msk.bf16.mxu1 %vm3584_vm1, %v3583_v8 }
 0x3bb   :  { %3247 = vmatprep.mubr.msk.bf16.mxu0 %vm3584_vm1, %v3583_v8 }
 0x443   :  { %v3814_v55 = vpop.f32.mrb[12].mxu1 }
 0x444   :  { %v3195_v56 = vpop.f32.mrb[13].mxu1 }
 0x445   :  { %v430_v57 = vpop.f32.mrb[14].mxu1 }
 0x446   :  { %v3196_v58 = vpop.f32.mrb[15].mxu1 }
 0x447   :  { %v3816_v59 = vpop.f32.mrb[8].mxu0 }
 0x448   :  { %v3201_v60 = vpop.f32.mrb[9].mxu0 }
 0x449   :  { %v478_v61 = vpop.f32.mrb[10].mxu0 }
 0x44a   :  { %v3202_v62 = vpop.f32.mrb[11].mxu0 }
 0x47c   :  { %v3818_v63 = vpop.f32.mrb[16].mxu1 }
 0x47d   :  { %v3820_v0 = vpop.f32.mrb[12].mxu0  ;;  %v3207_v1 = vpop.f32.mrb[17].mxu1 }
 0x47e   :  { %v3213_v5 = vpop.f32.mrb[13].mxu0  ;;  %v526_v7 = vpop.f32.mrb[18].mxu1 }
 0x47f   :  { %v574_v9 = vpop.f32.mrb[14].mxu0  ;;  %v3208_v10 = vpop.f32.mrb[19].mxu1 }
 0x480   :  { %v3214_v11 = vpop.f32.mrb[15].mxu0 }
 0x484   :  { %v621_v12 = vpop.f32.mrb[20].mxu1 }
 0x485   :  { %v777_v13 = vmul.f32 0.25, %v621_v12  ;;  %v671_v14 = vpop.f32.mrb[16].mxu0  ;;  %v3219_v16 = vpop.f32.mrb[21].mxu1 }
 0x486   :  { %v778_v17 = vmul.f32 0.25, %v671_v14  ;;  %v3225_v19 = vpop.f32.mrb[17].mxu0  ;;  %v624_v22 = vpop.f32.mrb[22].mxu1 }
 0x487   :  { %v674_v23 = vpop.f32.mrb[18].mxu0  ;;  %v3220_v24 = vpop.f32.mrb[23].mxu1  ;;  %v781_v25 = vsel %vm335_vm3, %v777_v13, -inf }
 0x488   :  { %v3226_v26 = vpop.f32.mrb[19].mxu0  ;;  %v784_v27 = vsel %vm335_vm3, %v778_v17, -inf  ;;  %782 = vmax.xlane.f32.xlu0 %v781_v25 }
 0x489   :  { %785 = vmax.xlane.f32.xlu1 %v784_v27 }
 0x48c   :  { %v721_v28 = vpop.f32.mrb[24].mxu1 }
 0x48d   :  { %v779_v29 = vmul.f32 0.25, %v721_v28  ;;  %v771_v30 = vpop.f32.mrb[20].mxu0  ;;  %v3231_v31 = vpop.f32.mrb[25].mxu1 }
 0x48e   :  { %v3237_v32 = vpop.f32.mrb[21].mxu0  ;;  %v724_v33 = vpop.f32.mrb[26].mxu1  ;;  %v780_v34 = vmul.f32 0.25, %v771_v30 }
 0x48f   :  { %v774_v35 = vpop.f32.mrb[22].mxu0  ;;  %v3232_v36 = vpop.f32.mrb[27].mxu1  ;;  %v787_v37 = vsel %vm335_vm3, %v779_v29, -inf }
 0x490   :  { %v3238_v38 = vpop.f32.mrb[23].mxu0  ;;  %788 = vmax.xlane.f32.xlu0 %v787_v37  ;;  %v790_v39 = vsel %vm335_vm3, %v780_v34, -inf }
 0x494   :  { %791 = vmax.xlane.f32.xlu0 %v790_v39 }
 0x49a   :  { %829 = vrot.lane.b32.xlu1 %v3704_v18, %s3589_s25 }
 0x515   :  { %v783_v40 = vpop.xlane.xlu0 %782 }
 0x516   :  { %v786_v41 = vpop.xlane.xlu1 %785  ;;  %v793_v42 = vsub.f32 %v777_v13, %v783_v40 }
 0x517   :  { %v794_v43 = vsub.f32 %v778_v17, %v786_v41 }
 0x518   :  { %v797_v44 = vmul.f32 1.442695, %v793_v42 }
 0x519   :  { %v799_v45 = vmul.f32 1.442695, %v794_v43 }
 0x51a   :  { %3487 = vpow2.f32 %v797_v44  ;;  %v830_v46 = vpop.permute.xlu1 %829 }
 0x51b   :  { %3489 = vpow2.f32 %v799_v45  ;;  %v835_v47 = vsel %vm389_vm4, %v830_v46, 0 }
 0x51c   :  { %3240 = vmatpush3.bf16.msra.mxu1 %v835_v47 }
 0x51d   :  { %v789_v48 = vpop.xlane.xlu0 %788  ;;  %3251 = vmatprep.subr.bf16.mxu1 %v3583_v8 }
 0x51e   :  { %v795_v49 = vsub.f32 %v779_v29, %v789_v48  ;;  %v3453_v29 = vld [vmem:[%s4244_s3] sm:$0xff]  }
 0x520   :  { %v801_v50 = vmul.f32 1.442695, %v795_v49 }
 0x521   :  { %v792_v51 = vpop.xlane.xlu0 %791 }
 0x522   :  { %3491 = vpow2.f32 %v801_v50  ;;  %v796_v18 = vsub.f32 %v780_v34, %v792_v51  ;;  %v3454_v34 = vld [vmem:[%s4244_s3 + $0x8] sm:$0xff]  }
 0x524   :  { %v3488_v52 = vpop.eup %3487  ;;  %v803_v53 = vmul.f32 1.442695, %v796_v18 }
 0x525   :  { %v3490_v54 = vpop.eup %3489  ;;  %v805_v56 = vsel %vm335_vm3, %v3488_v52, 0.0 }
 0x526   :  { %3493 = vpow2.f32 %v803_v53  ;;  %v808_v57 = vsel %vm335_vm3, %v3490_v54, 0.0  ;;  %806 = vadd.xlane.f32.xlu1 %v805_v56 }
 0x527   :  { %809 = vadd.xlane.f32.xlu0 %v808_v57 }
 0x52c   :  { %v3492_v58 = vpop.eup %3491 }
 0x52d   :  { %v811_v60 = vsel %vm335_vm3, %v3492_v58, 0.0 }
 0x52e   :  { %812 = vadd.xlane.f32.xlu1 %v811_v60 }
 0x530   :  { %v3494_v61 = vpop.eup %3493 }
 0x531   :  { %v814_v62 = vsel %vm335_vm3, %v3494_v61, 0.0 }
 0x532   :  { %815 = vadd.xlane.f32.xlu0 %v814_v62 }
 0x53f   :  { %925 = vrot.lane.b32.xlu1 %v3702_v15, %s3589_s25 }
 0x543   :  { %973 = vrot.lane.b32.xlu1 %v3710_v20, %s3589_s25 }
 0x548   :  { %877 = vrot.lane.b32.xlu0 %v3712_v21, %s3589_s25 }
 0x5b3   :  { %v807_v1 = vpop.xlane.xlu1 %806 }
 0x5b4   :  { %3495 = vrcp.f32 %v807_v1  ;;  %v810_v5 = vpop.xlane.xlu0 %809 }
 0x5b5   :  { %3497 = vrcp.f32 %v810_v5 }
 0x5bb   :  { %v813_v7 = vpop.xlane.xlu1 %812 }
 0x5bc   :  { %3499 = vrcp.f32 %v813_v7 }
 0x5be   :  { %v3496_v9 = vpop.eup %3495 }
 0x5bf   :  { %v3498_v10 = vpop.eup %3497  ;;  %v818_v11 = vmul.f32 %v3496_v9, %v3488_v52  ;;  %v926_v12 = vpop.permute.xlu1 %925 }
 0x5c0   :  { %v816_v13 = vpop.xlane.xlu0 %815  ;;  %v820_v15 = vmul.f32 %v3498_v10, %v3490_v54  ;;  %v931_v16 = vsel %vm389_vm4, %v926_v12, 0 }
 0x5c1   :  { %3501 = vrcp.f32 %v816_v13  ;;  %v825_v14 = vpack.c.bf16 %v818_v11, %v818_v11 }
 0x5c2   :  { %v826_v22 = vpack.c.bf16 %v820_v15, %v820_v15 }
 0x5c3   :  { %3242 = vmatmul.mubr.msk.bf16.vlgmr.msra.gmra.mrb[28].mxu1 %vm335_vm3, %v825_v14  ;;  %v974_v17 = vpop.permute.xlu1 %973 }
 0x5c4   :  { %v878_v20 = vpop.permute.xlu0 %877  ;;  %3252 = vmatpush3.bf16.msra.mxu1 %v931_v16  ;;  %3253 = vmatprep.mubr.msk.bf16.mxu1 %vm3584_vm1, %v3583_v8  ;;  %v979_v24 = vsel %vm389_vm4, %v974_v17, 0 }
 0x5c5   :  { %v883_v21 = vsel %vm389_vm4, %v878_v20, 0  ;;  %3263 = vmatprep.subr.bf16.mxu1 %v3453_v29 }
 0x5c6   :  { %3246 = vmatpush3.bf16.msra.mxu0 %v883_v21  ;;  %v3500_v19 = vpop.eup %3499 }
 0x5c7   :  { %3257 = vmatprep.subr.bf16.mxu0 %v3583_v8  ;;  %v822_v23 = vmul.f32 %v3500_v19, %v3492_v58 }
 0x5c9   :  { %3248 = vmatmul.mubr.msk.bf16.vlgmr.msra.gmra.mrb[24].mxu0 %vm335_vm3, %v826_v22  ;;  %v827_v25 = vpack.c.bf16 %v822_v23, %v822_v23 }
 0x5ca   :  { %3258 = vmatpush3.bf16.msra.mxu0 %v979_v24  ;;  %3259 = vmatprep.mubr.msk.bf16.mxu0 %vm3584_vm1, %v3583_v8 }
 0x5cb   :  { %v3502_v26 = vpop.eup %3501  ;;  %3254 = vmatmul.mubr.msk.bf16.vlgmr.msra.gmra.mrb[32].mxu1 %vm335_vm3, %v827_v25 }
 0x5cc   :  { %v824_v27 = vmul.f32 %v3502_v26, %v3494_v61  ;;  %3264 = vmatpush3.bf16.msra.mxu1 %v3453_v29 }
 0x5cd   :  { %3265 = vmatprep.subr.bf16.mxu1 %v3454_v34 }
 0x5ce   :  { %v828_v28 = vpack.c.bf16 %v824_v27, %v824_v27 }
 0x5d0   :  { %3266 = vmatpush3.bf16.msra.mxu1 %v3454_v34 }
 0x5d1   :  { %3260 = vmatmul.mubr.msk.bf16.vlgmr.msra.gmra.mrb[28].mxu0 %vm335_vm3, %v828_v28 }
 0x696   :  { %v871_v30 = vpop.f32.mrb[28].mxu1 }
 0x697   :  { %v3243_v31 = vpop.f32.mrb[29].mxu1 }
 0x698   :  { %v874_v32 = vpop.f32.mrb[30].mxu1 }
 0x699   :  { %v3244_v33 = vpop.f32.mrb[31].mxu1 }
 0x69c   :  { %v919_v35 = vpop.f32.mrb[24].mxu0 }
 0x69d   :  { %v3431_v36 = vpack.i.bf16 %v919_v35, %v871_v30  ;;  %v3249_v37 = vpop.f32.mrb[25].mxu0  ;;  %v3455_v35 = vld [vmem:[%s4246_s7] sm:$0xff]  }
 0x69e   :  { %v922_v38 = vpop.f32.mrb[26].mxu0  ;;  %v967_v39 = vpop.f32.mrb[32].mxu1  ;;  %3271 = vmatprep.subr.bf16.mxu0 %v3455_v35 }
 0x69f   :  { %3432 = vrot.lane.b32.xlu0 %v3431_v36, %s3590_s30  ;;  %v3250_v40 = vpop.f32.mrb[27].mxu0  ;;  %v3255_v41 = vpop.f32.mrb[33].mxu1  ;;  %v3456_v36 = vld [vmem:[%s4246_s7 + $0x8] sm:$0xff]   ;;  %3272 = vmatpush3.bf16.msra.mxu0 %v3455_v35 }
 0x6a0   :  { %v970_v42 = vpop.f32.mrb[34].mxu1  ;;  %3273 = vmatprep.subr.bf16.mxu0 %v3456_v36 }
 0x6a1   :  { %v3256_v43 = vpop.f32.mrb[35].mxu1 }
 0x6a3   :  { %3274 = vmatpush3.bf16.msra.mxu0 %v3456_v36 }
 0x6a4   :  { %v1015_v44 = vpop.f32.mrb[28].mxu0 }
 0x6a5   :  { %v3436_v45 = vpack.i.bf16 %v1015_v44, %v967_v39  ;;  %v3261_v46 = vpop.f32.mrb[29].mxu0 }
 0x6a6   :  { %v1018_v47 = vpop.f32.mrb[30].mxu0 }
 0x6a7   :  { %3437 = vrot.lane.b32.xlu1 %v3436_v45, %s3590_s30  ;;  %v3262_v48 = vpop.f32.mrb[31].mxu0 }
 0x711   :  { %v3433_v49 = vpop.permute.xlu0 %3432 }
 0x712   :  { %v3435_v50 = vunpack.i.h.bf16 %v3433_v49  ;;  %v3434_v51 = vunpack.i.l.bf16 %v3433_v49 }
 0x714   :  { %v1038_v18 = vsel %vm137_vm2, %v3816_v59, %v3435_v50  ;;  %v1037_v52 = vsel %vm137_vm2, %v3814_v55, %v3434_v51  ;;  %v2968_v59 = vld [vmem:[%s4245_s4] ss:$0 sm:$0xff] }
 0x715   :  { %v1041_v53 = vpack.c.bf16 %v1038_v18, %v1037_v52  ;;  %v2973_v50 = vld [vmem:[%s4247_s5] ss:$0 sm:$0xff] }
 0x717   :  { %3267 = vmatprep.mubr.msk.bf16.mxu1 %vm74_vm0, %v1041_v53 }
 0x719   :  { %v3438_v54 = vpop.permute.xlu1 %3437 }
 0x71a   :  { %v3440_v56 = vunpack.i.h.bf16 %v3438_v54  ;;  %v3439_v57 = vunpack.i.l.bf16 %v3438_v54 }
 0x71c   :  { %v1040_v58 = vsel %vm137_vm2, %v3820_v0, %v3440_v56  ;;  %v1039_v60 = vsel %vm137_vm2, %v3818_v63, %v3439_v57  ;;  %v2974_v56 = vld [vmem:[%s4248_s6] ss:$0 sm:$0xff] }
 0x71d   :  { %v1042_v61 = vpack.c.bf16 %v1040_v58, %v1039_v60 }
 0x71f   :  { %3268 = vmatmul.mubr.msk.bf16.vlgmr.msra.gmra.mrb[36].mxu1 %vm74_vm0, %v1042_v61 }
 0x7f2   :  { %v3269_v55 = vpop.f32.mrb[36].mxu1 }
 0x7f3   :  { %v1106_v62 = vpop.f32.mrb[37].mxu1  ;;  %v1115_v1 = vadd.f32 %v3269_v55, %v2968_v59 }
 0x7f4   :  { %v1107_v5 = vadd.f32 %v2968_v59, %v1106_v62  ;;  %v3270_v7 = vpop.f32.mrb[38].mxu1 }
 0x7f5   :  { %v1109_v9 = vpop.f32.mrb[39].mxu1  ;;  %v1118_v0 = vadd.f32 %v3270_v7, %v2968_v59  ;;  %v1123_v13 = vadd.f32 %v1115_v1, %v3680_v4 }
 0x7f6   :  { %v1110_v10 = vadd.f32 %v2968_v59, %v1109_v9  ;;  %v1121_v11 = vadd.f32 %v1107_v5, %v3670_v2 }
 0x7f7   :  { %v1133_v15 = vsel %vm74_vm0, %v1123_v13, 0.0  ;;  %v1124_v16 = vadd.f32 %v1118_v0, %v3687_v6  ;;  %v3458_v0 = vld [vmem:[%s4249_s9 + $0x8] sm:$0xff]  }
 0x7f8   :  { %v1127_v12 = vsel %vm74_vm0, %v1121_v11, 0.0  ;;  %v1122_v63 = vadd.f32 %v1110_v10, %v3675_v3 }
 0x7f9   :  { %1128 = vadd.xlane.f32.xlu0 %v1127_v12  ;;  %v1136_v20 = vsel %vm74_vm0, %v1124_v16, 0.0  ;;  %v3459_v12 = vld [vmem:[%s4249_s9 + $0x10] sm:$0xff]  }
 0x7fa   :  { %v1130_v14 = vsel %vm74_vm0, %v1122_v63, 0.0 }
 0x7fb   :  { %1131 = vadd.xlane.f32.xlu1 %v1130_v14 }
 0x7fd   :  { %1134 = vadd.xlane.f32.xlu0 %v1133_v15 }
 0x801   :  { %1137 = vadd.xlane.f32.xlu0 %v1136_v20 }
 0x886   :  { %v1129_v2 = vpop.xlane.xlu0 %1128 }
 0x887   :  { %v1140_v21 = vmul.f32 0.03125, %v1129_v2 }
 0x888   :  { %v1132_v17 = vpop.xlane.xlu1 %1131 }
 0x889   :  { %v1144_v19 = vsub.f32 %v1121_v11, %v1140_v21  ;;  %v1141_v22 = vmul.f32 0.03125, %v1132_v17  ;;  %v3457_v11 = vld [vmem:[%s4249_s9] sm:$0xff]  }
 0x88a   :  { %v1135_v3 = vpop.xlane.xlu0 %1134  ;;  %3279 = vmatprep.subr.bf16.mxu1 %v3457_v11 }
 0x88b   :  { %v1145_v23 = vsub.f32 %v1122_v63, %v1141_v22  ;;  %v1142_v4 = vmul.f32 0.03125, %v1135_v3  ;;  %v1148_v24 = vmul.f32 %v1144_v19, %v1144_v19  ;;  %3280 = vmatpush3.bf16.msra.mxu1 %v3457_v11  ;;  %v3460_v63 = vld [vmem:[%s4249_s9 + $0x18] sm:$0xff]  }
 0x88c   :  { %3281 = vmatprep.subr.bf16.mxu1 %v3458_v0 }
 0x88d   :  { %v1146_v25 = vsub.f32 %v1123_v13, %v1142_v4  ;;  %v1152_v26 = vsel %vm74_vm0, %v1148_v24, 0.0  ;;  %v1149_v27 = vmul.f32 %v1145_v23, %v1145_v23  ;;  %v2975_v13 = vld [vmem:[%s4250_s8] ss:$0 sm:$0xff] }
 0x88e   :  { %1153 = vadd.xlane.f32.xlu1 %v1152_v26  ;;  %v1138_v28 = vpop.xlane.xlu0 %1137 }
 0x88f   :  { %v1143_v6 = vmul.f32 0.03125, %v1138_v28  ;;  %v1155_v29 = vsel %vm74_vm0, %v1149_v27, 0.0  ;;  %v1150_v30 = vmul.f32 %v1146_v25, %v1146_v25  ;;  %3282 = vmatpush3.bf16.msra.mxu1 %v3458_v0 }
 0x890   :  { %1156 = vadd.xlane.f32.xlu0 %v1155_v29  ;;  %3283 = vmatprep.subr.bf16.mxu1 %v3459_v12 }
 0x891   :  { %v1147_v31 = vsub.f32 %v1124_v16, %v1143_v6  ;;  %v1158_v32 = vsel %vm74_vm0, %v1150_v30, 0.0 }
 0x892   :  { %1159 = vadd.xlane.f32.xlu1 %v1158_v32 }
 0x893   :  { %v1151_v33 = vmul.f32 %v1147_v31, %v1147_v31  ;;  %3284 = vmatpush3.bf16.msra.mxu1 %v3459_v12 }
 0x894   :  { %3285 = vmatprep.subr.bf16.mxu1 %v3460_v63 }
 0x895   :  { %v1161_v34 = vsel %vm74_vm0, %v1151_v33, 0.0 }
 0x896   :  { %1162 = vadd.xlane.f32.xlu0 %v1161_v34 }
 0x897   :  { %3286 = vmatpush3.bf16.msra.mxu1 %v3460_v63 }
 0x898   :  { %3305 = vmatprep.subr.bf16.mxu1 %v3583_v8 }
 0x91b   :  { %v1154_v37 = vpop.xlane.xlu1 %1153 }
 0x91c   :  { %v1164_v38 = vmul.f32 0.03125, %v1154_v37 }
 0x91d   :  { %v1157_v39 = vpop.xlane.xlu0 %1156 }
 0x91e   :  { %v1168_v40 = vadd.f32 1e-12, %v1164_v38  ;;  %v1165_v41 = vmul.f32 0.03125, %v1157_v39 }
 0x91f   :  { %v1160_v42 = vpop.xlane.xlu1 %1159 }
 0x920   :  { %3503 = vrsqrt.f32 %v1168_v40  ;;  %v1169_v43 = vadd.f32 1e-12, %v1165_v41  ;;  %v1166_v44 = vmul.f32 0.03125, %v1160_v42 }
 0x922   :  { %3505 = vrsqrt.f32 %v1169_v43  ;;  %v1170_v45 = vadd.f32 1e-12, %v1166_v44 }
 0x923   :  { %v1163_v46 = vpop.xlane.xlu0 %1162 }
 0x924   :  { %3507 = vrsqrt.f32 %v1170_v45  ;;  %v1167_v47 = vmul.f32 0.03125, %v1163_v46 }
 0x926   :  { %v1171_v48 = vadd.f32 1e-12, %v1167_v47 }
 0x928   :  { %3509 = vrsqrt.f32 %v1171_v48 }
 0x92a   :  { %v3504_v49 = vpop.eup %3503 }
 0x92b   :  { %v1176_v51 = vmul.f32 %v3504_v49, %v1144_v19 }
 0x92c   :  { %v3506_v18 = vpop.eup %3505 }
 0x92d   :  { %v1177_v52 = vmul.f32 %v3506_v18, %v1145_v23  ;;  %v1186_v53 = vmul.f32 %v2973_v50, %v1176_v51 }
 0x92e   :  { %v3508_v54 = vpop.eup %3507 }
 0x92f   :  { %v1178_v57 = vmul.f32 %v3508_v54, %v1146_v25  ;;  %v1187_v58 = vmul.f32 %v2973_v50, %v1177_v52  ;;  %v3897_v60 = vadd.f32 %v2974_v56, %v1186_v53 }
 0x931   :  { %v3899_v61 = vadd.f32 %v2974_v56, %v1187_v58  ;;  %v1188_v55 = vmul.f32 %v2973_v50, %v1178_v57  ;;  %v2980_v57 = vld [vmem:[%s4251_s10] ss:$0 sm:$0xff] }
 0x932   :  { %v3510_v59 = vpop.eup %3509 }
 0x933   :  { %v1179_v62 = vmul.f32 %v3510_v59, %v1147_v31  ;;  %v1200_v1 = vpack.c.bf16 %v3899_v61, %v3897_v60  ;;  %v3904_v7 = vadd.f32 %v2974_v56, %v1188_v55 }
 0x935   :  { %v1189_v5 = vmul.f32 %v2973_v50, %v1179_v62  ;;  %3275 = vmatprep.mubr.msk.bf16.mxu0 %vm74_vm0, %v1200_v1 }
 0x937   :  { %v3906_v9 = vadd.f32 %v2974_v56, %v1189_v5 }
 0x939   :  { %v1201_v10 = vpack.c.bf16 %v3906_v9, %v3904_v7 }
 0x93b   :  { %3276 = vmatmul.mubr.msk.bf16.vlgmr.msra.gmra.mrb[32].mxu0 %vm74_vm0, %v1201_v10 }
 0xa0e   :  { %v3277_v14 = vpop.f32.mrb[32].mxu0 }
 0xa0f   :  { %v1274_v15 = vadd.f32 %v3277_v14, %v2975_v13  ;;  %v1265_v16 = vpop.f32.mrb[33].mxu0 }
 0xa10   :  { %v1266_v20 = vadd.f32 %v2975_v13, %v1265_v16  ;;  %v3278_v2 = vpop.f32.mrb[34].mxu0 }
 0xa11   :  { %v1282_v21 = vmul.f32 %v1274_v15, %v1274_v15  ;;  %v1277_v17 = vadd.f32 %v3278_v2, %v2975_v13  ;;  %v1268_v19 = vpop.f32.mrb[35].mxu0 }
 0xa12   :  { %v1280_v22 = vmul.f32 %v1266_v20, %v1266_v20  ;;  %v1269_v3 = vadd.f32 %v2975_v13, %v1268_v19 }
 0xa13   :  { %v1286_v23 = vmul.f32 %v1282_v21, %v1274_v15  ;;  %v1283_v4 = vmul.f32 %v1277_v17, %v1277_v17 }
 0xa14   :  { %v1284_v24 = vmul.f32 %v1280_v22, %v1266_v20  ;;  %v1281_v25 = vmul.f32 %v1269_v3, %v1269_v3 }
 0xa15   :  { %v1290_v26 = vmul.f32 0.044715, %v1286_v23  ;;  %v1287_v27 = vmul.f32 %v1283_v4, %v1277_v17 }
 0xa16   :  { %v1288_v28 = vmul.f32 0.044715, %v1284_v24  ;;  %v1285_v6 = vmul.f32 %v1281_v25, %v1269_v3 }
 0xa17   :  { %v1294_v29 = vadd.f32 %v1290_v26, %v1274_v15  ;;  %v1291_v30 = vmul.f32 0.044715, %v1287_v27 }
 0xa18   :  { %v1292_v31 = vadd.f32 %v1288_v28, %v1266_v20  ;;  %v1289_v32 = vmul.f32 0.044715, %v1285_v6 }
 0xa19   :  { %v1298_v33 = vmul.f32 0.7978846, %v1294_v29  ;;  %v1295_v34 = vadd.f32 %v1291_v30, %v1277_v17 }
 0xa1a   :  { %v1296_v35 = vmul.f32 0.7978846, %v1292_v31  ;;  %v1293_v36 = vadd.f32 %v1289_v32, %v1269_v3  ;;  %v3461_v31 = vld [vmem:[%s4241_s1 + $0x10] sm:$0xff]   ;;  %v3462_v32 = vld [vmem:[%s4241_s1 + $0x18] sm:$0xff]  }
 0xa1b   :  { %3511 = vtanh.f32 %v1298_v33  ;;  %v1299_v37 = vmul.f32 0.7978846, %v1295_v34  ;;  %3291 = vmatprep.subr.bf16.mxu0 %v3461_v31 }
 0xa1c   :  { %3513 = vtanh.f32 %v1296_v35  ;;  %v1297_v38 = vmul.f32 0.7978846, %v1293_v36  ;;  %3292 = vmatpush3.bf16.msra.mxu0 %v3461_v31 }
 0xa1d   :  { %3515 = vtanh.f32 %v1299_v37  ;;  %3293 = vmatprep.subr.bf16.mxu0 %v3462_v32 }
 0xa1e   :  { %3517 = vtanh.f32 %v1297_v38 }
 0xa20   :  { %3294 = vmatpush3.bf16.msra.mxu0 %v3462_v32 }
 0xa21   :  { %3299 = vmatprep.subr.bf16.mxu0 %v3583_v8 }
 0xa25   :  { %v3512_v39 = vpop.eup %3511 }
 0xa26   :  { %v3514_v40 = vpop.eup %3513  ;;  %v1306_v41 = vadd.f32 1.0, %v3512_v39 }
 0xa27   :  { %v3516_v42 = vpop.eup %3515  ;;  %v1304_v43 = vadd.f32 1.0, %v3514_v40 }
 0xa28   :  { %v3518_v44 = vpop.eup %3517  ;;  %v1310_v45 = vmul.f32 0.5, %v1306_v41  ;;  %v1307_v46 = vadd.f32 1.0, %v3516_v42 }
 0xa29   :  { %v1308_v47 = vmul.f32 0.5, %v1304_v43  ;;  %v1305_v48 = vadd.f32 1.0, %v3518_v44 }
 0xa2a   :  { %v1311_v49 = vmul.f32 0.5, %v1307_v46  ;;  %v1314_v51 = vmul.f32 %v1310_v45, %v1274_v15  ;;  %v2987_v46 = vld [vmem:[%s4252_s11] ss:$0 sm:$0xff] }
 0xa2b   :  { %v1309_v50 = vmul.f32 0.5, %v1305_v48  ;;  %v1312_v52 = vmul.f32 %v1308_v47, %v1266_v20 }
 0xa2c   :  { %v1315_v18 = vmul.f32 %v1311_v49, %v1277_v17 }
 0xa2d   :  { %v1313_v53 = vmul.f32 %v1309_v50, %v1269_v3 }
 0xa2e   :  { %v1317_v54 = vpack.c.bf16 %v1315_v18, %v1314_v51  ;;  %v2988_v18 = vld [vmem:[%s4253_s12] ss:$0 sm:$0xff] }
 0xa2f   :  { %v1316_v56 = vpack.c.bf16 %v1313_v53, %v1312_v52 }
 0xa31   :  { %3287 = vmatprep.mubr.msk.bf16.mxu1 %vm1357_vm5, %v1316_v56 }
 0xa32   :  { %3288 = vmatmul.mubr.msk.bf16.vlgmr.msra.gmra.mrb[40].mxu1 %vm1357_vm5, %v1317_v54 }
 0xa33   :  { %3307 = vmatprep.mubr.msk.bf16.mxu1 %vm3584_vm1, %v3583_v8 }
 0xb05   :  { %v3289_v58 = vpop.f32.mrb[40].mxu1 }
 0xb06   :  { %v1398_v59 = vpop.f32.mrb[41].mxu1  ;;  %v1407_v55 = vadd.f32 %v3289_v58, %v2980_v57 }
 0xb07   :  { %v1399_v62 = vadd.f32 %v2980_v57, %v1398_v59  ;;  %v3290_v1 = vpop.f32.mrb[42].mxu1 }
 0xb08   :  { %v1401_v5 = vpop.f32.mrb[43].mxu1  ;;  %v1410_v10 = vadd.f32 %v3290_v1, %v2980_v57  ;;  %v1415_v13 = vadd.f32 %v1407_v55, %v3904_v7 }
 0xb09   :  { %v1402_v11 = vadd.f32 %v2980_v57, %v1401_v5  ;;  %v1413_v0 = vadd.f32 %v1399_v62, %v3897_v60 }
 0xb0a   :  { %v1416_v15 = vadd.f32 %v1410_v10, %v3906_v9  ;;  %v1425_v16 = vsel %vm74_vm0, %v1415_v13, 0.0 }
 0xb0b   :  { %v1419_v12 = vsel %vm74_vm0, %v1413_v0, 0.0  ;;  %v1414_v63 = vadd.f32 %v1402_v11, %v3899_v61  ;;  %v2994_v11 = vld [vmem:[%s4243_s2 + $0x1] ss:$0 sm:$0xff] }
 0xb0c   :  { %1420 = vadd.xlane.f32.xlu1 %v1419_v12  ;;  %v1428_v20 = vsel %vm74_vm0, %v1416_v15, 0.0 }
 0xb0d   :  { %v1422_v14 = vsel %vm74_vm0, %v1414_v63, 0.0 }
 0xb0e   :  { %1423 = vadd.xlane.f32.xlu0 %v1422_v14 }
 0xb10   :  { %1426 = vadd.xlane.f32.xlu1 %v1425_v16 }
 0xb12   :  { %1429 = vadd.xlane.f32.xlu0 %v1428_v20 }
 0xb99   :  { %v1421_v2 = vpop.xlane.xlu1 %1420 }
 0xb9a   :  { %v1431_v60 = vmul.f32 0.03125, %v1421_v2 }
 0xb9b   :  { %v1424_v21 = vpop.xlane.xlu0 %1423 }
 0xb9c   :  { %v1435_v17 = vsub.f32 %v1413_v0, %v1431_v60  ;;  %v1432_v19 = vmul.f32 0.03125, %v1424_v21 }
 0xb9d   :  { %v1427_v61 = vpop.xlane.xlu1 %1426 }
 0xb9e   :  { %v1436_v22 = vsub.f32 %v1414_v63, %v1432_v19  ;;  %v1433_v7 = vmul.f32 0.03125, %v1427_v61  ;;  %v1439_v3 = vmul.f32 %v1435_v17, %v1435_v17 }
 0xb9f   :  { %v1430_v23 = vpop.xlane.xlu0 %1429 }
 0xba0   :  { %v1437_v4 = vsub.f32 %v1415_v13, %v1433_v7  ;;  %v1434_v24 = vmul.f32 0.03125, %v1430_v23  ;;  %v1443_v9 = vsel %vm74_vm0, %v1439_v3, 0.0  ;;  %v1440_v25 = vmul.f32 %v1436_v22, %v1436_v22 }
 0xba1   :  { %1444 = vadd.xlane.f32.xlu1 %v1443_v9 }
 0xba2   :  { %v1438_v26 = vsub.f32 %v1416_v15, %v1434_v24  ;;  %v1446_v27 = vsel %vm74_vm0, %v1440_v25, 0.0  ;;  %v1441_v28 = vmul.f32 %v1437_v4, %v1437_v4 }
 0xba3   :  { %1447 = vadd.xlane.f32.xlu0 %v1446_v27 }
 0xba4   :  { %v1449_v6 = vsel %vm74_vm0, %v1441_v28, 0.0  ;;  %v1442_v29 = vmul.f32 %v1438_v26, %v1438_v26 }
 0xba5   :  { %1450 = vadd.xlane.f32.xlu1 %v1449_v6 }
 0xba6   :  { %v1452_v30 = vsel %vm74_vm0, %v1442_v29, 0.0 }
 0xba7   :  { %1453 = vadd.xlane.f32.xlu0 %v1452_v30 }
 0xc2e   :  { %v1445_v33 = vpop.xlane.xlu1 %1444 }
 0xc2f   :  { %v1455_v34 = vmul.f32 0.03125, %v1445_v33 }
 0xc30   :  { %v1448_v35 = vpop.xlane.xlu0 %1447 }
 0xc31   :  { %v1459_v36 = vadd.f32 1e-12, %v1455_v34  ;;  %v1456_v37 = vmul.f32 0.03125, %v1448_v35 }
 0xc32   :  { %v1451_v38 = vpop.xlane.xlu1 %1450 }
 0xc33   :  { %3519 = vrsqrt.f32 %v1459_v36  ;;  %v1460_v39 = vadd.f32 1e-12, %v1456_v37  ;;  %v1457_v40 = vmul.f32 0.03125, %v1451_v38 }
 0xc34   :  { %v1454_v41 = vpop.xlane.xlu0 %1453 }
 0xc35   :  { %3521 = vrsqrt.f32 %v1460_v39  ;;  %v1461_v42 = vadd.f32 1e-12, %v1457_v40  ;;  %v1458_v43 = vmul.f32 0.03125, %v1454_v41 }
 0xc37   :  { %3523 = vrsqrt.f32 %v1461_v42  ;;  %v1462_v44 = vadd.f32 1e-12, %v1458_v43 }
 0xc39   :  { %3525 = vrsqrt.f32 %v1462_v44 }
 0xc3d   :  { %v3520_v45 = vpop.eup %3519 }
 0xc3e   :  { %v1467_v47 = vmul.f32 %v3520_v45, %v1435_v17 }
 0xc3f   :  { %v3522_v48 = vpop.eup %3521 }
 0xc40   :  { %v1468_v49 = vmul.f32 %v3522_v48, %v1436_v22  ;;  %v1477_v50 = vmul.f32 %v2987_v46, %v1467_v47 }
 0xc41   :  { %v3524_v51 = vpop.eup %3523 }
 0xc42   :  { %v1469_v52 = vmul.f32 %v3524_v51, %v1437_v4  ;;  %v1478_v53 = vmul.f32 %v2987_v46, %v1468_v49  ;;  %v3959_v58 = vadd.f32 %v2988_v18, %v1477_v50 }
 0xc43   :  { %v3526_v54 = vpop.eup %3525 }
 0xc44   :  { %v1479_v56 = vmul.f32 %v2987_v46, %v1469_v52  ;;  %v1470_v57 = vmul.f32 %v3526_v54, %v1438_v26  ;;  %v3961_v59 = vadd.f32 %v2988_v18, %v1478_v53 }
 0xc46   :  { %v1480_v55 = vmul.f32 %v2987_v46, %v1470_v57  ;;  %v1491_v62 = vpack.c.bf16 %v3961_v59, %v3959_v58  ;;  %v3966_v1 = vadd.f32 %v2988_v18, %v1479_v56 }
 0xc48   :  { %3295 = vmatprep.mubr.msk.bf16.mxu0 %vm74_vm0, %v1491_v62  ;;  %v3968_v5 = vadd.f32 %v2988_v18, %v1480_v55 }
 0xc4a   :  { %v1492_v10 = vpack.c.bf16 %v3968_v5, %v3966_v1 }
 0xc4c   :  { %3296 = vmatmul.mubr.msk.bf16.vlgmr.msra.gmra.mrb[36].mxu0 %vm74_vm0, %v1492_v10 }
 0xc4d   :  { %3301 = vmatprep.mubr.msk.bf16.mxu0 %vm3584_vm1, %v3583_v8 }
 0xd1f   :  { %v3297_v0 = vpop.f32.mrb[36].mxu0 }
 0xd20   :  { %v1558_v12 = vpop.f32.mrb[37].mxu0  ;;  %v1567_v15 = vadd.f32 %v3297_v0, %v2994_v11 }
 0xd21   :  { %v1559_v63 = vadd.f32 %v2994_v11, %v1558_v12  ;;  %v3298_v13 = vpop.f32.mrb[38].mxu0 }
 0xd22   :  { %v1561_v14 = vpop.f32.mrb[39].mxu0  ;;  %v3984_v60 = vpack.c.bf16 %v1567_v15, %v1567_v15  ;;  %v1570_v21 = vadd.f32 %v3298_v13, %v2994_v11 }
 0xd23   :  { %v3978_v16 = vpack.c.bf16 %v1559_v63, %v1559_v63  ;;  %v1562_v20 = vadd.f32 %v2994_v11, %v1561_v14 }
 0xd24   :  { %v3990_v17 = vpack.c.bf16 %v1570_v21, %v1570_v21 }
 0xd25   :  { %v3980_v2 = vpack.c.bf16 %v1562_v20, %v1562_v20  ;;  %1578 = vrot.lane.b32.xlu1 %v3978_v16, %s3585_s0 }
 0xd27   :  { %1627 = vrot.lane.b32.xlu0 %v3980_v2, %s3585_s0 }
 0xd29   :  { %1676 = vrot.lane.b32.xlu1 %v3984_v60, %s3585_s0 }
 0xd2d   :  { %1725 = vrot.lane.b32.xlu1 %v3990_v17, %s3585_s0 }
 0xd97   :  { %v1579_v19 = vpop.permute.xlu1 %1578 }
 0xd98   :  { %v1584_v61 = vsel %vm137_vm2, %v1579_v19, 0 }
 0xd99   :  { %v1628_v22 = vpop.permute.xlu0 %1627  ;;  %3300 = vmatpush3.bf16.xpose.msra.mxu0 %v1584_v61 }
 0xd9a   :  { %v1633_v7 = vsel %vm137_vm2, %v1628_v22, 0  ;;  %3311 = vmatprep.subr.bf16.mxu0 %v3583_v8 }
 0xd9b   :  { %3306 = vmatpush3.bf16.xpose.msra.mxu1 %v1633_v7  ;;  %v1677_v3 = vpop.permute.xlu1 %1676 }
 0xd9c   :  { %3317 = vmatprep.subr.bf16.mxu1 %v3583_v8  ;;  %v1682_v4 = vsel %vm137_vm2, %v1677_v3, 0 }
 0xd9f   :  { %v1726_v23 = vpop.permute.xlu1 %1725 }
 0xda0   :  { %3302 = vmatmul.mubr.msk.bf16.vlgmr.msra.gmra.mrb[40].mxu0 %vm137_vm2, %v3978_v16  ;;  %v1731_v24 = vsel %vm137_vm2, %v1726_v23, 0 }
 0xda1   :  { %3312 = vmatpush3.bf16.xpose.msra.mxu0 %v1682_v4  ;;  %3313 = vmatprep.mubr.msk.bf16.mxu0 %vm3584_vm1, %v3583_v8 }
 0xda2   :  { %3308 = vmatmul.mubr.msk.bf16.vlgmr.msra.gmra.mrb[44].mxu1 %vm137_vm2, %v3980_v2  ;;  %3323 = vmatprep.subr.bf16.mxu0 %v3583_v8 }
 0xda3   :  { %3318 = vmatpush3.bf16.xpose.msra.mxu1 %v1731_v24  ;;  %3319 = vmatprep.mubr.msk.bf16.mxu1 %vm3584_vm1, %v3583_v8 }
 0xda4   :  { %3329 = vmatprep.subr.bf16.mxu1 %v3583_v8 }
 0xda8   :  { %3314 = vmatmul.mubr.msk.bf16.vlgmr.msra.gmra.mrb[44].mxu0 %vm137_vm2, %v3984_v60 }
 0xda9   :  { %3325 = vmatprep.mubr.msk.bf16.mxu0 %vm3584_vm1, %v3583_v8 }
 0xdaa   :  { %3320 = vmatmul.mubr.msk.bf16.vlgmr.msra.gmra.mrb[48].mxu1 %vm137_vm2, %v3990_v17 }
 0xdab   :  { %3331 = vmatprep.mubr.msk.bf16.mxu1 %vm3584_vm1, %v3583_v8 }
 0xe73   :  { %v1620_v9 = vpop.f32.mrb[40].mxu0 }
 0xe74   :  { %v1773_v25 = vmul.f32 0.25, %v1620_v9  ;;  %v3303_v26 = vpop.f32.mrb[41].mxu0 }
 0xe75   :  { %v1623_v27 = vpop.f32.mrb[42].mxu0  ;;  %v1669_v28 = vpop.f32.mrb[44].mxu1 }
 0xe76   :  { %v1774_v6 = vmul.f32 0.25, %v1669_v28  ;;  %v3304_v29 = vpop.f32.mrb[43].mxu0  ;;  %v3309_v30 = vpop.f32.mrb[45].mxu1  ;;  %v1777_v31 = vsel %vm335_vm3, %v1773_v25, -inf }
 0xe77   :  { %v1672_v32 = vpop.f32.mrb[46].mxu1  ;;  %1778 = vmax.xlane.f32.xlu0 %v1777_v31 }
 0xe78   :  { %v3310_v33 = vpop.f32.mrb[47].mxu1  ;;  %v1780_v34 = vsel %vm335_vm3, %v1774_v6, -inf }
 0xe79   :  { %1781 = vmax.xlane.f32.xlu1 %v1780_v34 }
 0xe7b   :  { %v1718_v35 = vpop.f32.mrb[44].mxu0 }
 0xe7c   :  { %v1775_v36 = vmul.f32 0.25, %v1718_v35  ;;  %v3315_v37 = vpop.f32.mrb[45].mxu0 }
 0xe7d   :  { %v1721_v38 = vpop.f32.mrb[46].mxu0  ;;  %v1767_v39 = vpop.f32.mrb[48].mxu1 }
 0xe7e   :  { %v1776_v40 = vmul.f32 0.25, %v1767_v39  ;;  %v3316_v41 = vpop.f32.mrb[47].mxu0  ;;  %v3321_v42 = vpop.f32.mrb[49].mxu1  ;;  %v1783_v43 = vsel %vm335_vm3, %v1775_v36, -inf }
 0xe7f   :  { %1784 = vmax.xlane.f32.xlu0 %v1783_v43  ;;  %v1770_v44 = vpop.f32.mrb[50].mxu1 }
 0xe80   :  { %v3322_v45 = vpop.f32.mrb[51].mxu1  ;;  %v1786_v46 = vsel %vm335_vm3, %v1776_v40, -inf }
 0xe83   :  { %1787 = vmax.xlane.f32.xlu0 %v1786_v46 }
 0xe8a   :  { %1825 = vrot.lane.b32.xlu1 %v3978_v16, %s3586_s22 }
 0xf04   :  { %v1779_v47 = vpop.xlane.xlu0 %1778 }
 0xf05   :  { %v1789_v48 = vsub.f32 %v1773_v25, %v1779_v47 }
 0xf06   :  { %v1782_v49 = vpop.xlane.xlu1 %1781 }
 0xf07   :  { %v1793_v50 = vmul.f32 1.442695, %v1789_v48  ;;  %v1790_v51 = vsub.f32 %v1774_v6, %v1782_v49 }
 0xf09   :  { %3527 = vpow2.f32 %v1793_v50  ;;  %v1795_v18 = vmul.f32 1.442695, %v1790_v51 }
 0xf0a   :  { %v1826_v52 = vpop.permute.xlu1 %1825 }
 0xf0b   :  { %3529 = vpow2.f32 %v1795_v18  ;;  %v1831_v53 = vsel %vm389_vm4, %v1826_v52, 0 }
 0xf0c   :  { %3324 = vmatpush3.bf16.msra.mxu0 %v1831_v53  ;;  %v1785_v62 = vpop.xlane.xlu0 %1784 }
 0xf0d   :  { %3335 = vmatprep.subr.bf16.mxu0 %v3583_v8  ;;  %v1791_v0 = vsub.f32 %v1775_v36, %v1785_v62 }
 0xf0f   :  { %v1797_v63 = vmul.f32 1.442695, %v1791_v0 }
 0xf10   :  { %v1788_v10 = vpop.xlane.xlu0 %1787 }
 0xf11   :  { %v1792_v11 = vsub.f32 %v1776_v40, %v1788_v10 }
 0xf13   :  { %v3528_v54 = vpop.eup %3527  ;;  %v1799_v12 = vmul.f32 1.442695, %v1792_v11 }
 0xf14   :  { %v1801_v56 = vsel %vm335_vm3, %v3528_v54, 0.0 }
 0xf15   :  { %v3530_v57 = vpop.eup %3529  ;;  %1802 = vadd.xlane.f32.xlu1 %v1801_v56  ;;  %3531 = vpow2.f32 %v1799_v12 }
 0xf16   :  { %v1804_v55 = vsel %vm335_vm3, %v3530_v57, 0.0  ;;  %3533 = vpow2.f32 %v1797_v63 }
 0xf17   :  { %1805 = vadd.xlane.f32.xlu0 %v1804_v55 }
 0xf1f   :  { %v3532_v13 = vpop.eup %3531 }
 0xf20   :  { %v3534_v14 = vpop.eup %3533  ;;  %v1810_v15 = vsel %vm335_vm3, %v3532_v13, 0.0 }
 0xf21   :  { %v1807_v20 = vsel %vm335_vm3, %v3534_v14, 0.0 }
 0xf26   :  { %1921 = vrot.lane.b32.xlu1 %v3984_v60, %s3586_s22 }
 0xf2a   :  { %1969 = vrot.lane.b32.xlu1 %v3990_v17, %s3586_s22 }
 0xf2d   :  { %1873 = vrot.lane.b32.xlu0 %v3980_v2, %s3586_s22 }
 0xf4c   :  { %1811 = vadd.xlane.f32.xlu0 %v1810_v15 }
 0xf4e   :  { %1808 = vadd.xlane.f32.xlu1 %v1807_v20 }
 0xf5f   :  { %2069 = vrot.lane.b32.xlu1 %v3980_v2, %s3587_s23 }
 0xf62   :  { %2019 = vrot.lane.b32.xlu0 %v3978_v16, %s3587_s23 }
 0xf63   :  { %2067 = vrot.lane.b32.xlu1 %v3980_v2, %s3588_s24 }
 0xf66   :  { %2017 = vrot.lane.b32.xlu0 %v3978_v16, %s3588_s24 }
 0xf67   :  { %2169 = vrot.lane.b32.xlu1 %v3990_v17, %s3587_s23 }
 0xf6a   :  { %2119 = vrot.lane.b32.xlu0 %v3984_v60, %s3587_s23 }
 0xf6b   :  { %2167 = vrot.lane.b32.xlu1 %v3990_v17, %s3588_s24 }
 0xf6e   :  { %2117 = vrot.lane.b32.xlu0 %v3984_v60, %s3588_s24 }
 0xfa2   :  { %v1803_v21 = vpop.xlane.xlu1 %1802 }
 0xfa3   :  { %3535 = vrcp.f32 %v1803_v21 }
 0xfa4   :  { %v1806_v19 = vpop.xlane.xlu0 %1805 }
 0xfa5   :  { %3537 = vrcp.f32 %v1806_v19 }
 0xfa6   :  { %v1922_v7 = vpop.permute.xlu1 %1921 }
 0xfa7   :  { %v1927_v26 = vsel %vm389_vm4, %v1922_v7, 0 }
 0xfa8   :  { %v1874_v61 = vpop.permute.xlu0 %1873 }
 0xfa9   :  { %v1879_v22 = vsel %vm389_vm4, %v1874_v61, 0 }
 0xfaa   :  { %3330 = vmatpush3.bf16.msra.mxu1 %v1879_v22  ;;  %v1970_v25 = vpop.permute.xlu1 %1969 }
 0xfab   :  { %3341 = vmatprep.subr.bf16.mxu1 %v3583_v8  ;;  %v1975_v28 = vsel %vm389_vm4, %v1970_v25, 0 }
 0xfad   :  { %v3536_v3 = vpop.eup %3535 }
 0xfae   :  { %v1814_v23 = vmul.f32 %v3536_v3, %v3528_v54 }
 0xfaf   :  { %v3538_v4 = vpop.eup %3537 }
 0xfb0   :  { %v1816_v24 = vmul.f32 %v3538_v4, %v3530_v57  ;;  %v1821_v9 = vpack.c.bf16 %v1814_v23, %v1814_v23 }
 0xfb2   :  { %3326 = vmatmul.mubr.msk.bf16.vlgmr.msra.gmra.mrb[48].mxu0 %vm335_vm3, %v1821_v9  ;;  %v1822_v27 = vpack.c.bf16 %v1816_v24, %v1816_v24 }
 0xfb3   :  { %3336 = vmatpush3.bf16.msra.mxu0 %v1927_v26  ;;  %3337 = vmatprep.mubr.msk.bf16.mxu0 %vm3584_vm1, %v3583_v8 }
 0xfb4   :  { %3332 = vmatmul.mubr.msk.bf16.vlgmr.msra.gmra.mrb[52].mxu1 %vm335_vm3, %v1822_v27  ;;  %3347 = vmatprep.subr.bf16.mxu0 %v3583_v8 }
 0xfb5   :  { %3342 = vmatpush3.bf16.msra.mxu1 %v1975_v28  ;;  %3343 = vmatprep.mubr.msk.bf16.mxu1 %vm3584_vm1, %v3583_v8 }
 0xfb6   :  { %3353 = vmatprep.subr.bf16.mxu1 %v3583_v8 }
 0xfd9   :  { %v1812_v6 = vpop.xlane.xlu0 %1811 }
 0xfda   :  { %3539 = vrcp.f32 %v1812_v6 }
 0xfdb   :  { %v1809_v29 = vpop.xlane.xlu1 %1808 }
 0xfdc   :  { %3541 = vrcp.f32 %v1809_v29 }
 0xfdd   :  { %v2020_v32 = vpop.permute.xlu0 %2019 }
 0xfde   :  { %v2025_v41 = vsel %vm137_vm2, %v2020_v32, 0 }
 0xfdf   :  { %v2070_v30 = vpop.permute.xlu1 %2069 }
 0xfe0   :  { %v2075_v38 = vsel %vm137_vm2, %v2070_v30, 0 }
 0xfe1   :  { %v2018_v40 = vpop.permute.xlu0 %2017 }
 0xfe3   :  { %v2068_v37 = vpop.permute.xlu1 %2067 }
 0xfe4   :  { %v3540_v31 = vpop.eup %3539 }
 0xfe5   :  { %v1820_v33 = vmul.f32 %v3540_v31, %v3532_v13  ;;  %v2120_v43 = vpop.permute.xlu0 %2119 }
 0xfe6   :  { %v3542_v34 = vpop.eup %3541  ;;  %v2125_v45 = vsel %vm137_vm2, %v2120_v43, 0 }
 0xfe7   :  { %v1818_v35 = vmul.f32 %v3542_v34, %v3534_v14  ;;  %v1824_v36 = vpack.c.bf16 %v1820_v33, %v1820_v33  ;;  %v2170_v42 = vpop.permute.xlu1 %2169 }
 0xfe8   :  { %v2175_v44 = vsel %vm137_vm2, %v2170_v42, 0 }
 0xfe9   :  { %3344 = vmatmul.mubr.msk.bf16.vlgmr.msra.gmra.mrb[56].mxu1 %vm335_vm3, %v1824_v36  ;;  %v1823_v39 = vpack.c.bf16 %v1818_v35, %v1818_v35  ;;  %v2118_v47 = vpop.permute.xlu0 %2117 }
 0xfea   :  { %3354 = vmatpush3.bf16.xpose.msra.mxu1 %v2075_v38  ;;  %3355 = vmatprep.mubr.msk.bf16.mxu1 %vm3584_vm1, %v3583_v8 }
 0xfeb   :  { %3338 = vmatmul.mubr.msk.bf16.vlgmr.msra.gmra.mrb[52].mxu0 %vm335_vm3, %v1823_v39  ;;  %3365 = vmatprep.subr.bf16.mxu1 %v3583_v8  ;;  %v2168_v46 = vpop.permute.xlu1 %2167 }
 0xfec   :  { %3348 = vmatpush3.bf16.xpose.msra.mxu0 %v2025_v41  ;;  %3349 = vmatprep.mubr.msk.bf16.mxu0 %vm3584_vm1, %v3583_v8 }
 0xfed   :  { %3359 = vmatprep.subr.bf16.mxu0 %v3583_v8 }
 0xff1   :  { %3356 = vmatmul.mubr.msk.bf16.vlgmr.msra.gmra.mrb[60].mxu1 %vm137_vm2, %v2068_v37 }
 0xff2   :  { %3366 = vmatpush3.bf16.xpose.msra.mxu1 %v2175_v44  ;;  %3367 = vmatprep.mubr.msk.bf16.mxu1 %vm3584_vm1, %v3583_v8 }
 0xff3   :  { %3350 = vmatmul.mubr.msk.bf16.vlgmr.msra.gmra.mrb[56].mxu0 %vm137_vm2, %v2018_v40  ;;  %3377 = vmatprep.subr.bf16.mxu1 %v3583_v8 }
 0xff4   :  { %3360 = vmatpush3.bf16.xpose.msra.mxu0 %v2125_v45  ;;  %3361 = vmatprep.mubr.msk.bf16.mxu0 %vm3584_vm1, %v3583_v8 }
 0xff5   :  { %3371 = vmatprep.subr.bf16.mxu0 %v3583_v8 }
 0xff9   :  { %3368 = vmatmul.mubr.msk.bf16.vlgmr.msra.gmra.mrb[64].mxu1 %vm137_vm2, %v2168_v46 }
 0xffa   :  { %3379 = vmatprep.mubr.msk.bf16.mxu1 %vm3584_vm1, %v3583_v8 }
 0xffb   :  { %3362 = vmatmul.mubr.msk.bf16.vlgmr.msra.gmra.mrb[60].mxu0 %vm137_vm2, %v2118_v47 }
 0xffc   :  { %3373 = vmatprep.mubr.msk.bf16.mxu0 %vm3584_vm1, %v3583_v8 }
0x1085   :  { %v4090_v48 = vpop.f32.mrb[48].mxu0 }
0x1086   :  { %v3327_v49 = vpop.f32.mrb[49].mxu0 }
0x1087   :  { %v1870_v50 = vpop.f32.mrb[50].mxu0  ;;  %v4092_v51 = vpop.f32.mrb[52].mxu1 }
0x1088   :  { %v3328_v18 = vpop.f32.mrb[51].mxu0  ;;  %v3333_v52 = vpop.f32.mrb[53].mxu1 }
0x1089   :  { %v1918_v53 = vpop.f32.mrb[54].mxu1 }
0x108a   :  { %v3334_v54 = vpop.f32.mrb[55].mxu1 }
0x10bc   :  { %v4094_v56 = vpop.f32.mrb[56].mxu1 }
0x10bd   :  { %v3345_v57 = vpop.f32.mrb[57].mxu1 }
0x10be   :  { %v4096_v55 = vpop.f32.mrb[52].mxu0  ;;  %v2014_v62 = vpop.f32.mrb[58].mxu1 }
0x10bf   :  { %v3339_v10 = vpop.f32.mrb[53].mxu0  ;;  %v3346_v11 = vpop.f32.mrb[59].mxu1 }
0x10c0   :  { %v1966_v0 = vpop.f32.mrb[54].mxu0 }
0x10c1   :  { %v3340_v12 = vpop.f32.mrb[55].mxu0 }
0x10c4   :  { %v2111_v63 = vpop.f32.mrb[60].mxu1 }
0x10c5   :  { %v2218_v13 = vmul.f32 0.25, %v2111_v63  ;;  %v3357_v14 = vpop.f32.mrb[61].mxu1 }
0x10c6   :  { %v2061_v15 = vpop.f32.mrb[56].mxu0  ;;  %v2114_v20 = vpop.f32.mrb[62].mxu1 }
0x10c7   :  { %v2217_v21 = vmul.f32 0.25, %v2061_v15  ;;  %v3351_v19 = vpop.f32.mrb[57].mxu0  ;;  %v3358_v61 = vpop.f32.mrb[63].mxu1  ;;  %v2224_v22 = vsel %vm335_vm3, %v2218_v13, -inf }
0x10c8   :  { %v2064_v7 = vpop.f32.mrb[58].mxu0  ;;  %2225 = vmax.xlane.f32.xlu1 %v2224_v22 }
0x10c9   :  { %v3352_v3 = vpop.f32.mrb[59].mxu0  ;;  %v2221_v23 = vsel %vm335_vm3, %v2217_v21, -inf }
0x10ca   :  { %2222 = vmax.xlane.f32.xlu0 %v2221_v23 }
0x10cc   :  { %v2211_v4 = vpop.f32.mrb[64].mxu1 }
0x10cd   :  { %v3369_v24 = vpop.f32.mrb[65].mxu1  ;;  %v2220_v29 = vmul.f32 0.25, %v2211_v4 }
0x10ce   :  { %v2161_v9 = vpop.f32.mrb[60].mxu0  ;;  %v2214_v25 = vpop.f32.mrb[66].mxu1  ;;  %v3463_v24 = vld [vmem:[%s4244_s3 + $0x10] sm:$0xff]  }
0x10cf   :  { %v2219_v26 = vmul.f32 0.25, %v2161_v9  ;;  %v3363_v27 = vpop.f32.mrb[61].mxu0  ;;  %v3370_v28 = vpop.f32.mrb[67].mxu1  ;;  %v2230_v32 = vsel %vm335_vm3, %v2220_v29, -inf }
0x10d0   :  { %v2164_v6 = vpop.f32.mrb[62].mxu0 }
0x10d1   :  { %v3364_v30 = vpop.f32.mrb[63].mxu0  ;;  %v2227_v31 = vsel %vm335_vm3, %v2219_v26, -inf }
0x10d2   :  { %2228 = vmax.xlane.f32.xlu0 %v2227_v31 }
0x10d6   :  { %2231 = vmax.xlane.f32.xlu0 %v2230_v32 }
0x10d9   :  { %2269 = vrot.lane.b32.xlu1 %v3978_v16, %s3589_s25 }
0x1155   :  { %v2226_v33 = vpop.xlane.xlu1 %2225 }
0x1156   :  { %v2234_v34 = vsub.f32 %v2218_v13, %v2226_v33 }
0x1157   :  { %v2223_v35 = vpop.xlane.xlu0 %2222 }
0x1158   :  { %v2239_v36 = vmul.f32 1.442695, %v2234_v34  ;;  %v2233_v37 = vsub.f32 %v2217_v21, %v2223_v35 }
0x1159   :  { %v2270_v38 = vpop.permute.xlu1 %2269 }
0x115a   :  { %3543 = vpow2.f32 %v2239_v36  ;;  %v2237_v39 = vmul.f32 1.442695, %v2233_v37  ;;  %v2275_v40 = vsel %vm389_vm4, %v2270_v38, 0 }
0x115b   :  { %3372 = vmatpush3.bf16.msra.mxu0 %v2275_v40 }
0x115c   :  { %3545 = vpow2.f32 %v2237_v39  ;;  %3383 = vmatprep.subr.bf16.mxu0 %v3583_v8 }
0x115f   :  { %v2229_v41 = vpop.xlane.xlu0 %2228 }
0x1160   :  { %v2235_v42 = vsub.f32 %v2219_v26, %v2229_v41 }
0x1162   :  { %v2241_v43 = vmul.f32 1.442695, %v2235_v42 }
0x1163   :  { %v2232_v44 = vpop.xlane.xlu0 %2231 }
0x1164   :  { %v3544_v45 = vpop.eup %3543  ;;  %3547 = vpow2.f32 %v2241_v43  ;;  %v2236_v16 = vsub.f32 %v2220_v29, %v2232_v44 }
0x1165   :  { %v2248_v46 = vsel %vm335_vm3, %v3544_v45, 0.0 }
0x1166   :  { %v3546_v47 = vpop.eup %3545  ;;  %v2243_v49 = vmul.f32 1.442695, %v2236_v16  ;;  %2249 = vadd.xlane.f32.xlu0 %v2248_v46 }
0x1167   :  { %v2245_v50 = vsel %vm335_vm3, %v3546_v47, 0.0 }
0x1168   :  { %3549 = vpow2.f32 %v2243_v49  ;;  %2246 = vadd.xlane.f32.xlu1 %v2245_v50 }
0x116e   :  { %v3548_v18 = vpop.eup %3547 }
0x116f   :  { %v2251_v52 = vsel %vm335_vm3, %v3548_v18, 0.0 }
0x1170   :  { %2252 = vadd.xlane.f32.xlu1 %v2251_v52 }
0x1172   :  { %v3550_v53 = vpop.eup %3549 }
0x1173   :  { %v2254_v54 = vsel %vm335_vm3, %v3550_v53, 0.0 }
0x1174   :  { %2255 = vadd.xlane.f32.xlu0 %v2254_v54 }
0x1181   :  { %2365 = vrot.lane.b32.xlu1 %v3984_v60, %s3589_s25 }
0x1185   :  { %2413 = vrot.lane.b32.xlu1 %v3990_v17, %s3589_s25 }
0x118a   :  { %2317 = vrot.lane.b32.xlu0 %v3980_v2, %s3589_s25 }
0x11f3   :  { %v2250_v57 = vpop.xlane.xlu0 %2249 }
0x11f5   :  { %v2247_v62 = vpop.xlane.xlu1 %2246 }
0x11f6   :  { %3551 = vrcp.f32 %v2247_v62 }
0x11f7   :  { %3553 = vrcp.f32 %v2250_v57 }
0x11fd   :  { %v2253_v10 = vpop.xlane.xlu1 %2252 }
0x11fe   :  { %3555 = vrcp.f32 %v2253_v10 }
0x1200   :  { %v3552_v11 = vpop.eup %3551 }
0x1201   :  { %v3554_v0 = vpop.eup %3553  ;;  %v2258_v12 = vmul.f32 %v3552_v11, %v3546_v47  ;;  %v2256_v63 = vpop.xlane.xlu0 %2255 }
0x1202   :  { %v2366_v13 = vpop.permute.xlu1 %2365  ;;  %3557 = vrcp.f32 %v2256_v63  ;;  %v2260_v60 = vmul.f32 %v3554_v0, %v3544_v45 }
0x1203   :  { %v2265_v14 = vpack.c.bf16 %v2258_v12, %v2258_v12  ;;  %v2371_v15 = vsel %vm389_vm4, %v2366_v13, 0 }
0x1204   :  { %v2266_v19 = vpack.c.bf16 %v2260_v60, %v2260_v60 }
0x1205   :  { %v2318_v17 = vpop.permute.xlu0 %2317  ;;  %3374 = vmatmul.mubr.msk.bf16.vlgmr.msra.gmra.mrb[64].mxu0 %vm335_vm3, %v2265_v14 }
0x1206   :  { %v2323_v2 = vsel %vm389_vm4, %v2318_v17, 0  ;;  %3384 = vmatpush3.bf16.msra.mxu0 %v2371_v15  ;;  %3385 = vmatprep.mubr.msk.bf16.mxu0 %vm3584_vm1, %v3583_v8  ;;  %v2414_v20 = vpop.permute.xlu1 %2413 }
0x1207   :  { %3378 = vmatpush3.bf16.msra.mxu1 %v2323_v2  ;;  %v2419_v22 = vsel %vm389_vm4, %v2414_v20, 0  ;;  %3395 = vmatprep.subr.bf16.mxu0 %v3463_v24 }
0x1208   :  { %v3556_v21 = vpop.eup %3555  ;;  %3389 = vmatprep.subr.bf16.mxu1 %v3583_v8 }
0x1209   :  { %v2262_v61 = vmul.f32 %v3556_v21, %v3548_v18 }
0x120a   :  { %3380 = vmatmul.mubr.msk.bf16.vlgmr.msra.gmra.mrb[68].mxu1 %vm335_vm3, %v2266_v19 }
0x120b   :  { %3390 = vmatpush3.bf16.msra.mxu1 %v2419_v22  ;;  %v2267_v7 = vpack.c.bf16 %v2262_v61, %v2262_v61  ;;  %3391 = vmatprep.mubr.msk.bf16.mxu1 %vm3584_vm1, %v3583_v8  ;;  %v3464_v8 = vld [vmem:[%s4244_s3 + $0x18] sm:$0xff]  }
0x120c   :  { %v3558_v3 = vpop.eup %3557 }
0x120d   :  { %v2264_v23 = vmul.f32 %v3558_v3, %v3550_v53  ;;  %3386 = vmatmul.mubr.msk.bf16.vlgmr.msra.gmra.mrb[68].mxu0 %vm335_vm3, %v2267_v7 }
0x120e   :  { %3396 = vmatpush3.bf16.msra.mxu0 %v3463_v24 }
0x120f   :  { %v2268_v4 = vpack.c.bf16 %v2264_v23, %v2264_v23  ;;  %3397 = vmatprep.subr.bf16.mxu0 %v3464_v8 }
0x1212   :  { %3392 = vmatmul.mubr.msk.bf16.vlgmr.msra.gmra.mrb[72].mxu1 %vm335_vm3, %v2268_v4  ;;  %3398 = vmatpush3.bf16.msra.mxu0 %v3464_v8  ;;  %v3465_v8 = vld [vmem:[%s4246_s7 + $0x10] sm:$0xff]  }
0x1213   :  { %3403 = vmatprep.subr.bf16.mxu1 %v3465_v8 }
0x1214   :  { %3404 = vmatpush3.bf16.msra.mxu1 %v3465_v8 }
0x12d8   :  { %v2311_v9 = vpop.f32.mrb[64].mxu0 }
0x12d9   :  { %v3375_v25 = vpop.f32.mrb[65].mxu0 }
0x12da   :  { %v2314_v26 = vpop.f32.mrb[66].mxu0 }
0x12db   :  { %v3376_v27 = vpop.f32.mrb[67].mxu0 }
0x12dd   :  { %v2359_v28 = vpop.f32.mrb[68].mxu1 }
0x12de   :  { %v3441_v6 = vpack.i.bf16 %v2359_v28, %v2311_v9  ;;  %v3381_v29 = vpop.f32.mrb[69].mxu1  ;;  %v3466_v28 = vld [vmem:[%s4246_s7 + $0x18] sm:$0xff]  }
0x12df   :  { %v2362_v30 = vpop.f32.mrb[70].mxu1  ;;  %3405 = vmatprep.subr.bf16.mxu1 %v3466_v28 }
0x12e0   :  { %v3382_v31 = vpop.f32.mrb[71].mxu1  ;;  %3442 = vrot.lane.b32.xlu0 %v3441_v6, %s3590_s30  ;;  %v2407_v32 = vpop.f32.mrb[68].mxu0  ;;  %3406 = vmatpush3.bf16.msra.mxu1 %v3466_v28 }
0x12e1   :  { %v3387_v33 = vpop.f32.mrb[69].mxu0 }
0x12e2   :  { %v2410_v34 = vpop.f32.mrb[70].mxu0 }
0x12e3   :  { %v3388_v35 = vpop.f32.mrb[71].mxu0 }
0x12e5   :  { %v2455_v36 = vpop.f32.mrb[72].mxu1 }
0x12e6   :  { %v3446_v37 = vpack.i.bf16 %v2455_v36, %v2407_v32  ;;  %v3393_v38 = vpop.f32.mrb[73].mxu1 }
0x12e7   :  { %v2458_v39 = vpop.f32.mrb[74].mxu1 }
0x12e8   :  { %3447 = vrot.lane.b32.xlu1 %v3446_v37, %s3590_s30  ;;  %v3394_v40 = vpop.f32.mrb[75].mxu1 }
0x1352   :  { %v3443_v41 = vpop.permute.xlu0 %3442 }
0x1353   :  { %v3445_v42 = vunpack.i.h.bf16 %v3443_v41  ;;  %v3444_v43 = vunpack.i.l.bf16 %v3443_v41  ;;  %v3027_v41 = vld [vmem:[%s4247_s5 + $0x1] ss:$0 sm:$0xff] }
0x1355   :  { %v2478_v44 = vsel %vm137_vm2, %v4092_v51, %v3445_v42  ;;  %v2477_v45 = vsel %vm137_vm2, %v4090_v48, %v3444_v43  ;;  %v3020_v51 = vld [vmem:[%s4245_s4 + $0x1] ss:$0 sm:$0xff] }
0x1356   :  { %v2481_v16 = vpack.c.bf16 %v2478_v44, %v2477_v45 }
0x1358   :  { %3399 = vmatprep.mubr.msk.bf16.mxu0 %vm74_vm0, %v2481_v16 }
0x135a   :  { %v3448_v46 = vpop.permute.xlu1 %3447 }
0x135b   :  { %v3450_v47 = vunpack.i.h.bf16 %v3448_v46  ;;  %v3449_v49 = vunpack.i.l.bf16 %v3448_v46  ;;  %v3028_v46 = vld [vmem:[%s4248_s6 + $0x1] ss:$0 sm:$0xff] }
0x135d   :  { %v2480_v50 = vsel %vm137_vm2, %v4094_v56, %v3450_v47  ;;  %v2479_v18 = vsel %vm137_vm2, %v4096_v55, %v3449_v49 }
0x135e   :  { %v2482_v52 = vpack.c.bf16 %v2480_v50, %v2479_v18 }
0x1360   :  { %3400 = vmatmul.mubr.msk.bf16.vlgmr.msra.gmra.mrb[72].mxu0 %vm74_vm0, %v2482_v52 }
0x1433   :  { %v3401_v48 = vpop.f32.mrb[72].mxu0 }
0x1434   :  { %v2548_v53 = vpop.f32.mrb[73].mxu0  ;;  %v2557_v54 = vadd.f32 %v3401_v48, %v3020_v51 }
0x1435   :  { %v2549_v57 = vadd.f32 %v3020_v51, %v2548_v53  ;;  %v3402_v62 = vpop.f32.mrb[74].mxu0 }
0x1436   :  { %v2551_v10 = vpop.f32.mrb[75].mxu0  ;;  %v2560_v56 = vadd.f32 %v3402_v62, %v3020_v51  ;;  %v2565_v63 = vadd.f32 %v2557_v54, %v3966_v1 }
0x1437   :  { %v2552_v11 = vadd.f32 %v3020_v51, %v2551_v10  ;;  %v2563_v0 = vadd.f32 %v2549_v57, %v3959_v58 }
0x1438   :  { %v2577_v14 = vsel %vm74_vm0, %v2565_v63, 0.0  ;;  %v2566_v60 = vadd.f32 %v2560_v56, %v3968_v5  ;;  %v3469_v56 = vld [vmem:[%s4249_s9 + $0x30] sm:$0xff]  }
0x1439   :  { %v2571_v12 = vsel %vm74_vm0, %v2563_v0, 0.0  ;;  %v2564_v55 = vadd.f32 %v2552_v11, %v3961_v59  ;;  %v3467_v11 = vld [vmem:[%s4249_s9 + $0x20] sm:$0xff]  }
0x143a   :  { %2572 = vadd.xlane.f32.xlu0 %v2571_v12  ;;  %v2580_v15 = vsel %vm74_vm0, %v2566_v60, 0.0  ;;  %3411 = vmatprep.subr.bf16.mxu0 %v3467_v11  ;;  %v3470_v12 = vld [vmem:[%s4249_s9 + $0x38] sm:$0xff]  }
0x143b   :  { %v2574_v13 = vsel %vm74_vm0, %v2564_v55, 0.0  ;;  %3412 = vmatpush3.bf16.msra.mxu0 %v3467_v11 }
0x143c   :  { %2575 = vadd.xlane.f32.xlu1 %v2574_v13 }
0x143e   :  { %2578 = vadd.xlane.f32.xlu0 %v2577_v14 }
0x1442   :  { %2581 = vadd.xlane.f32.xlu0 %v2580_v15 }
0x14c7   :  { %v2573_v58 = vpop.xlane.xlu0 %2572 }
0x14c8   :  { %v2583_v17 = vmul.f32 0.03125, %v2573_v58 }
0x14c9   :  { %v2576_v2 = vpop.xlane.xlu1 %2575 }
0x14ca   :  { %v2587_v20 = vsub.f32 %v2563_v0, %v2583_v17  ;;  %v2584_v21 = vmul.f32 0.03125, %v2576_v2  ;;  %v3468_v0 = vld [vmem:[%s4249_s9 + $0x28] sm:$0xff]  }
0x14cb   :  { %v2579_v59 = vpop.xlane.xlu0 %2578  ;;  %3413 = vmatprep.subr.bf16.mxu0 %v3468_v0 }
0x14cc   :  { %v2588_v19 = vsub.f32 %v2564_v55, %v2584_v21  ;;  %v2585_v1 = vmul.f32 0.03125, %v2579_v59  ;;  %v2591_v61 = vmul.f32 %v2587_v20, %v2587_v20  ;;  %3414 = vmatpush3.bf16.msra.mxu0 %v3468_v0  ;;  %v3034_v55 = vld [vmem:[%s4250_s8 + $0x1] ss:$0 sm:$0xff] }
0x14cd   :  { %3415 = vmatprep.subr.bf16.mxu0 %v3469_v56 }
0x14ce   :  { %v2589_v22 = vsub.f32 %v2565_v63, %v2585_v1  ;;  %v2595_v7 = vsel %vm74_vm0, %v2591_v61, 0.0  ;;  %v2592_v3 = vmul.f32 %v2588_v19, %v2588_v19 }
0x14cf   :  { %2596 = vadd.xlane.f32.xlu1 %v2595_v7  ;;  %v2582_v23 = vpop.xlane.xlu0 %2581 }
0x14d0   :  { %v2586_v5 = vmul.f32 0.03125, %v2582_v23  ;;  %v2598_v4 = vsel %vm74_vm0, %v2592_v3, 0.0  ;;  %v2593_v24 = vmul.f32 %v2589_v22, %v2589_v22  ;;  %3416 = vmatpush3.bf16.msra.mxu0 %v3469_v56 }
0x14d1   :  { %2599 = vadd.xlane.f32.xlu0 %v2598_v4  ;;  %3417 = vmatprep.subr.bf16.mxu0 %v3470_v12 }
0x14d2   :  { %v2590_v9 = vsub.f32 %v2566_v60, %v2586_v5  ;;  %v2601_v25 = vsel %vm74_vm0, %v2593_v24, 0.0 }
0x14d3   :  { %2602 = vadd.xlane.f32.xlu1 %v2601_v25 }
0x14d4   :  { %v2594_v26 = vmul.f32 %v2590_v9, %v2590_v9  ;;  %3418 = vmatpush3.bf16.msra.mxu0 %v3470_v12 }
0x14d6   :  { %v2604_v27 = vsel %vm74_vm0, %v2594_v26, 0.0 }
0x14d7   :  { %2605 = vadd.xlane.f32.xlu0 %v2604_v27 }
0x155c   :  { %v2597_v6 = vpop.xlane.xlu1 %2596 }
0x155d   :  { %v2607_v29 = vmul.f32 0.03125, %v2597_v6 }
0x155e   :  { %v2600_v30 = vpop.xlane.xlu0 %2599 }
0x155f   :  { %v2611_v31 = vadd.f32 1e-12, %v2607_v29  ;;  %v2608_v32 = vmul.f32 0.03125, %v2600_v30 }
0x1560   :  { %v2603_v33 = vpop.xlane.xlu1 %2602 }
0x1561   :  { %3559 = vrsqrt.f32 %v2611_v31  ;;  %v2612_v34 = vadd.f32 1e-12, %v2608_v32  ;;  %v2609_v35 = vmul.f32 0.03125, %v2603_v33 }
0x1563   :  { %3561 = vrsqrt.f32 %v2612_v34  ;;  %v2613_v36 = vadd.f32 1e-12, %v2609_v35 }
0x1564   :  { %v2606_v37 = vpop.xlane.xlu0 %2605 }
0x1565   :  { %3563 = vrsqrt.f32 %v2613_v36  ;;  %v2610_v38 = vmul.f32 0.03125, %v2606_v37 }
0x1567   :  { %v2614_v39 = vadd.f32 1e-12, %v2610_v38 }
0x1569   :  { %3565 = vrsqrt.f32 %v2614_v39 }
0x156b   :  { %v3560_v40 = vpop.eup %3559 }
0x156c   :  { %v2619_v42 = vmul.f32 %v3560_v40, %v2587_v20 }
0x156d   :  { %v3562_v43 = vpop.eup %3561 }
0x156e   :  { %v2620_v44 = vmul.f32 %v3562_v43, %v2588_v19  ;;  %v2629_v45 = vmul.f32 %v3027_v41, %v2619_v42 }
0x156f   :  { %v3564_v16 = vpop.eup %3563 }
0x1570   :  { %v2621_v47 = vmul.f32 %v3564_v16, %v2589_v22  ;;  %v2630_v49 = vmul.f32 %v3027_v41, %v2620_v44  ;;  %v4173_v50 = vadd.f32 %v3028_v46, %v2629_v45 }
0x1572   :  { %v4175_v18 = vadd.f32 %v3028_v46, %v2630_v49  ;;  %v2631_v51 = vmul.f32 %v3027_v41, %v2621_v47 }
0x1573   :  { %v3566_v52 = vpop.eup %3565 }
0x1574   :  { %v2622_v48 = vmul.f32 %v3566_v52, %v2590_v9  ;;  %v2643_v53 = vpack.c.bf16 %v4175_v18, %v4173_v50  ;;  %v4180_v57 = vadd.f32 %v3028_v46, %v2631_v51 }
0x1576   :  { %v2632_v54 = vmul.f32 %v3027_v41, %v2622_v48  ;;  %3407 = vmatprep.mubr.msk.bf16.mxu1 %vm74_vm0, %v2643_v53 }
0x1578   :  { %v4182_v62 = vadd.f32 %v3028_v46, %v2632_v54  ;;  %v3048_v46 = vld [vmem:[%s4251_s10 + $0x1] ss:$0 sm:$0xff] }
0x157a   :  { %v2644_v10 = vpack.c.bf16 %v4182_v62, %v4180_v57 }
0x157c   :  { %3408 = vmatmul.mubr.msk.bf16.vlgmr.msra.gmra.mrb[76].mxu1 %vm74_vm0, %v2644_v10 }
0x164f   :  { %v3409_v63 = vpop.f32.mrb[76].mxu1 }
0x1650   :  { %v2719_v13 = vadd.f32 %v3409_v63, %v3034_v55  ;;  %v2710_v14 = vpop.f32.mrb[77].mxu1 }
0x1651   :  { %v2711_v60 = vadd.f32 %v3034_v55, %v2710_v14  ;;  %v3410_v15 = vpop.f32.mrb[78].mxu1 }
0x1652   :  { %v2727_v58 = vmul.f32 %v2719_v13, %v2719_v13  ;;  %v2722_v17 = vadd.f32 %v3410_v15, %v3034_v55  ;;  %v2713_v2 = vpop.f32.mrb[79].mxu1 }
0x1653   :  { %v2725_v20 = vmul.f32 %v2711_v60, %v2711_v60  ;;  %v2714_v21 = vadd.f32 %v3034_v55, %v2713_v2 }
0x1654   :  { %v2731_v59 = vmul.f32 %v2727_v58, %v2719_v13  ;;  %v2728_v19 = vmul.f32 %v2722_v17, %v2722_v17 }
0x1655   :  { %v2729_v1 = vmul.f32 %v2725_v20, %v2711_v60  ;;  %v2726_v61 = vmul.f32 %v2714_v21, %v2714_v21 }
0x1656   :  { %v2735_v22 = vmul.f32 0.044715, %v2731_v59  ;;  %v2732_v7 = vmul.f32 %v2728_v19, %v2722_v17 }
0x1657   :  { %v2733_v3 = vmul.f32 0.044715, %v2729_v1  ;;  %v2730_v23 = vmul.f32 %v2726_v61, %v2714_v21 }
0x1658   :  { %v2739_v5 = vadd.f32 %v2735_v22, %v2719_v13  ;;  %v2736_v4 = vmul.f32 0.044715, %v2732_v7 }
0x1659   :  { %v2737_v24 = vadd.f32 %v2733_v3, %v2711_v60  ;;  %v2734_v9 = vmul.f32 0.044715, %v2730_v23 }
0x165a   :  { %v2743_v25 = vmul.f32 0.7978846, %v2739_v5  ;;  %v2740_v26 = vadd.f32 %v2736_v4, %v2722_v17 }
0x165b   :  { %v2741_v27 = vmul.f32 0.7978846, %v2737_v24  ;;  %v2738_v8 = vadd.f32 %v2734_v9, %v2714_v21 }
0x165c   :  { %3567 = vtanh.f32 %v2743_v25  ;;  %v2744_v28 = vmul.f32 0.7978846, %v2740_v26 }
0x165d   :  { %3569 = vtanh.f32 %v2741_v27  ;;  %v2742_v6 = vmul.f32 0.7978846, %v2738_v8 }
0x165e   :  { %3571 = vtanh.f32 %v2744_v28 }
0x165f   :  { %3573 = vtanh.f32 %v2742_v6 }
0x1666   :  { %v3568_v29 = vpop.eup %3567 }
0x1667   :  { %v3570_v30 = vpop.eup %3569  ;;  %v2751_v31 = vadd.f32 1.0, %v3568_v29 }
0x1668   :  { %v3572_v32 = vpop.eup %3571  ;;  %v2749_v33 = vadd.f32 1.0, %v3570_v30 }
0x1669   :  { %v3574_v34 = vpop.eup %3573  ;;  %v2755_v35 = vmul.f32 0.5, %v2751_v31  ;;  %v2752_v36 = vadd.f32 1.0, %v3572_v32 }
0x166a   :  { %v2753_v37 = vmul.f32 0.5, %v2749_v33  ;;  %v2750_v38 = vadd.f32 1.0, %v3574_v34  ;;  %v3057_v33 = vld [vmem:[%s4252_s11 + $0x1] ss:$0 sm:$0xff] }
0x166b   :  { %v2756_v39 = vmul.f32 0.5, %v2752_v36  ;;  %v2759_v41 = vmul.f32 %v2755_v35, %v2719_v13  ;;  %v3058_v36 = vld [vmem:[%s4253_s12 + $0x1] ss:$0 sm:$0xff] }
0x166c   :  { %v2754_v40 = vmul.f32 0.5, %v2750_v38  ;;  %v2757_v43 = vmul.f32 %v2753_v37, %v2711_v60 }
0x166d   :  { %v2760_v42 = vmul.f32 %v2756_v39, %v2722_v17 }
0x166e   :  { %v2758_v44 = vmul.f32 %v2754_v40, %v2714_v21 }
0x166f   :  { %v2762_v45 = vpack.c.bf16 %v2760_v42, %v2759_v41 }
0x1670   :  { %v2761_v16 = vpack.c.bf16 %v2758_v44, %v2757_v43 }
0x1672   :  { %3419 = vmatprep.mubr.msk.bf16.mxu0 %vm1357_vm5, %v2761_v16 }
0x1673   :  { %3420 = vmatmul.mubr.msk.bf16.vlgmr.msra.gmra.mrb[76].mxu0 %vm1357_vm5, %v2762_v45 }
0x1746   :  { %v3421_v47 = vpop.f32.mrb[76].mxu0 }
0x1747   :  { %v2844_v49 = vpop.f32.mrb[77].mxu0  ;;  %v2853_v52 = vadd.f32 %v3421_v47, %v3048_v46 }
0x1748   :  { %v2845_v51 = vadd.f32 %v3048_v46, %v2844_v49  ;;  %v3422_v48 = vpop.f32.mrb[78].mxu0 }
0x1749   :  { %v2847_v53 = vpop.f32.mrb[79].mxu0  ;;  %v2856_v10 = vadd.f32 %v3422_v48, %v3048_v46  ;;  %v2861_v0 = vadd.f32 %v2853_v52, %v4180_v57 }
0x174a   :  { %v2859_v54 = vadd.f32 %v2845_v51, %v4173_v50  ;;  %v2848_v11 = vadd.f32 %v3048_v46, %v2847_v53 }
0x174b   :  { %v2862_v55 = vadd.f32 %v2856_v10, %v4182_v62  ;;  %v2873_v13 = vsel %vm74_vm0, %v2861_v0, 0.0 }
0x174c   :  { %v2860_v56 = vadd.f32 %v2848_v11, %v4175_v18  ;;  %v2867_v12 = vsel %vm74_vm0, %v2859_v54, 0.0 }
0x174d   :  { %2868 = vadd.xlane.f32.xlu1 %v2867_v12  ;;  %v2876_v14 = vsel %vm74_vm0, %v2862_v55, 0.0 }
0x174e   :  { %v2870_v63 = vsel %vm74_vm0, %v2860_v56, 0.0 }
0x174f   :  { %2871 = vadd.xlane.f32.xlu0 %v2870_v63 }
0x1751   :  { %2874 = vadd.xlane.f32.xlu1 %v2873_v13 }
0x1753   :  { %2877 = vadd.xlane.f32.xlu0 %v2876_v14 }
0x17da   :  { %v2869_v50 = vpop.xlane.xlu1 %2868 }
0x17db   :  { %v2879_v60 = vmul.f32 0.03125, %v2869_v50 }
0x17dc   :  { %v2872_v15 = vpop.xlane.xlu0 %2871 }
0x17dd   :  { %v2883_v57 = vsub.f32 %v2859_v54, %v2879_v60  ;;  %v2880_v58 = vmul.f32 0.03125, %v2872_v15 }
0x17de   :  { %v2875_v18 = vpop.xlane.xlu1 %2874 }
0x17df   :  { %v2884_v17 = vsub.f32 %v2860_v56, %v2880_v58  ;;  %v2881_v2 = vmul.f32 0.03125, %v2875_v18  ;;  %v2887_v20 = vmul.f32 %v2883_v57, %v2883_v57 }
0x17e0   :  { %v2878_v21 = vpop.xlane.xlu0 %2877 }
0x17e1   :  { %v2885_v62 = vsub.f32 %v2861_v0, %v2881_v2  ;;  %v2882_v59 = vmul.f32 0.03125, %v2878_v21  ;;  %v2891_v19 = vsel %vm74_vm0, %v2887_v20, 0.0  ;;  %v2888_v1 = vmul.f32 %v2884_v17, %v2884_v17 }
0x17e2   :  { %2892 = vadd.xlane.f32.xlu1 %v2891_v19 }
0x17e3   :  { %v2886_v61 = vsub.f32 %v2862_v55, %v2882_v59  ;;  %v2894_v22 = vsel %vm74_vm0, %v2888_v1, 0.0  ;;  %v2889_v7 = vmul.f32 %v2885_v62, %v2885_v62 }
0x17e4   :  { %2895 = vadd.xlane.f32.xlu0 %v2894_v22 }
0x17e5   :  { %v2897_v3 = vsel %vm74_vm0, %v2889_v7, 0.0  ;;  %v2890_v23 = vmul.f32 %v2886_v61, %v2886_v61 }
0x17e6   :  { %2898 = vadd.xlane.f32.xlu1 %v2897_v3 }
0x17e7   :  { %v2900_v5 = vsel %vm74_vm0, %v2890_v23, 0.0 }
0x17e8   :  { %2901 = vadd.xlane.f32.xlu0 %v2900_v5 }
0x186f   :  { %v2893_v4 = vpop.xlane.xlu1 %2892 }
0x1870   :  { %v2903_v24 = vmul.f32 0.03125, %v2893_v4 }
0x1871   :  { %v2896_v9 = vpop.xlane.xlu0 %2895 }
0x1872   :  { %v2907_v25 = vadd.f32 1e-12, %v2903_v24  ;;  %v2904_v26 = vmul.f32 0.03125, %v2896_v9 }
0x1873   :  { %v2899_v27 = vpop.xlane.xlu1 %2898 }
0x1874   :  { %3575 = vrsqrt.f32 %v2907_v25  ;;  %v2908_v8 = vadd.f32 1e-12, %v2904_v26  ;;  %v2905_v28 = vmul.f32 0.03125, %v2899_v27 }
0x1875   :  { %v2902_v6 = vpop.xlane.xlu0 %2901 }
0x1876   :  { %3577 = vrsqrt.f32 %v2908_v8  ;;  %v2909_v29 = vadd.f32 1e-12, %v2905_v28  ;;  %v2906_v30 = vmul.f32 0.03125, %v2902_v6 }
0x1878   :  { %3579 = vrsqrt.f32 %v2909_v29  ;;  %v2910_v31 = vadd.f32 1e-12, %v2906_v30 }
0x187a   :  { %3581 = vrsqrt.f32 %v2910_v31 }
0x187e   :  { %v3576_v32 = vpop.eup %3575 }
0x187f   :  { %v2915_v34 = vmul.f32 %v3576_v32, %v2883_v57 }
0x1880   :  { %v3578_v35 = vpop.eup %3577 }
0x1881   :  { %v2925_v37 = vmul.f32 %v3057_v33, %v2915_v34  ;;  %v2916_v38 = vmul.f32 %v3578_v35, %v2884_v17 }
0x1882   :  { %v3580_v39 = vpop.eup %3579 }
0x1883   :  { %v2935_v40 = vadd.f32 %v3058_v36, %v2925_v37  ;;  %v2926_v41 = vmul.f32 %v3057_v33, %v2916_v38  ;;  %v2917_v42 = vmul.f32 %v3580_v39, %v2885_v62 }
0x1884   :  { %v3582_v43 = vpop.eup %3581 }
0x1885   :  { %2939 = vst.msk [vmem:[%s4254_s13] sm:$0xff] %vm74_vm0, %v2935_v40  ;;  %v2936_v44 = vadd.f32 %v3058_v36, %v2926_v41  ;;  %v2927_v45 = vmul.f32 %v3057_v33, %v2917_v42  ;;  %v2918_v16 = vmul.f32 %v3582_v43, %v2886_v61 }
0x1887   :  { %2940 = vst.msk [vmem:[%s4254_s13 + $0x8] sm:$0xff] %vm74_vm0, %v2936_v44  ;;  %v2937_v46 = vadd.f32 %v3058_v36, %v2927_v45  ;;  %v2928_v47 = vmul.f32 %v3057_v33, %v2918_v16 }
0x1889   :  { %2941 = vst.msk [vmem:[%s4254_s13 + $0x10] sm:$0xff] %vm74_vm0, %v2937_v46  ;;  %v2938_v49 = vadd.f32 %v3058_v36, %v2928_v47 }
0x188b   :  { %2942 = vst.msk [vmem:[%s4254_s13 + $0x18] sm:$0xff] %vm74_vm0, %v2938_v49 }

</bundles_post_ra>
